<compile_context>
chip_gen: v6e
topology: v6e:2x2x1
jax: 0.10.0
libtpu: 0.0.40
codegen_flags: <defaults>
</compile_context>

<pallas_src>
import functools

import jax
import jax.numpy as jnp
from jax import lax
from jax.experimental import pallas as pl
from jax.experimental.pallas import tpu as pltpu


def _block_kernel(x_ref, gamma_ref, beta_ref, gfwd_ref, gbwd_ref, wm_ref,
                  bias_ref, o_ref, *, Bt, H, WC, WCo, G, eps):
    # x_ref:     (Bt, H, WC)    Bt batch elements, lane-dense (WC = W*C)
    # gamma/beta:(1, WC)        GroupNorm affine, pre-tiled over W
    # gfwd_ref:  (2*WC, 2*G)    block-diag lane->group indicator (for sum, sumsq)
    # gbwd_ref:  (2*G, 2*WC)    block-diag group->lane expansion
    # wm_ref:    (3*WC, WCo)    banded conv weight, bf16 (WCo = W*Co)
    # bias_ref:  (1, WCo)       conv bias pre-tiled over W
    # o_ref:     (Bt, H, WCo)
    M = Bt * H
    x = x_ref[...].astype(jnp.float32)                               # (Bt, H, WC)

    # ---- GroupNorm statistics: per-sample sublane reduces + one tiny matmul ----
    colsum = jnp.concatenate(
        [jnp.sum(x, axis=1), jnp.sum(x * x, axis=1)], axis=1)        # (Bt, 2*WC)
    gs = jnp.dot(colsum, gfwd_ref[...],
                 preferred_element_type=jnp.float32)                 # (Bt, 2*G)
    n = jnp.float32(H * (WC // G))                                   # elems / group
    mean_g = gs[:, 0:G] / n
    # NOTE: one-pass E[x^2]-E[x]^2 in f32; can cancel for inputs whose |mean|
    # is much larger than their std (acceptable for normalized activations).
    var_g = jnp.maximum(gs[:, G:2 * G] / n - mean_g * mean_g, 0.0)
    inv_g = lax.rsqrt(var_g + eps)                                   # (Bt, G)

    # expand (inv, mean*inv) from groups to lanes with one tiny matmul
    ab = jnp.concatenate([inv_g, mean_g * inv_g], axis=1)            # (Bt, 2*G)
    lanes = jnp.dot(ab, gbwd_ref[...],
                    preferred_element_type=jnp.float32)              # (Bt, 2*WC)
    inv_lane = lanes[:, 0:WC].reshape(Bt, 1, WC)
    minv_lane = lanes[:, WC:2 * WC].reshape(Bt, 1, WC)
    gamma = gamma_ref[...]                                           # (1, WC)
    scale = gamma * inv_lane                                         # (Bt, 1, WC)
    shift = beta_ref[...] - gamma * minv_lane                        # (Bt, 1, WC)

    # ---- normalize + Swish (EUP exp + approx reciprocal sigmoid) ----
    y = x * scale + shift                                            # (Bt, H, WC)
    z = y * pl.reciprocal(1.0 + jnp.exp(-y), approx=True)
    z2 = z.reshape(M, WC)                                            # stacked rows

    # ---- 3x3 conv (padding=1) as one lane-dense bf16 MXU matmul ----
    # Row shifts via XLU rolls; iota row-mask zeros the top/bottom row of each
    # stacked sample so neighbouring samples never contaminate each other.
    row = lax.broadcasted_iota(jnp.int32, (M, 1), 0) % H
    up = jnp.where(row == 0, 0.0, pltpu.roll(z2, shift=1, axis=0))      # row h-1
    dn = jnp.where(row == H - 1, 0.0, pltpu.roll(z2, shift=M - 1, axis=0))  # row h+1
    patches = jnp.concatenate(
        [up.astype(jnp.bfloat16),
         z2.astype(jnp.bfloat16),
         dn.astype(jnp.bfloat16)], axis=1)                           # (M, 3*WC) bf16
    acc = jnp.dot(patches, wm_ref[...],
                  preferred_element_type=jnp.float32)                # (M, WCo)
    o_ref[...] = (acc + bias_ref[...]).reshape(Bt, H, WCo).astype(o_ref.dtype)


def _build_banded_weight(conv_w_hwio, W):
    """(3,3,Cin,Cout) HWIO -> banded (3*W*Cin, W*Cout) so that
    patches(M, 3*W*Cin) @ band == 3x3 'SAME' conv output laid out as (M, W*Cout)."""
    kh, kw, Ci, Co = conv_w_hwio.shape
    wi_idx = jnp.arange(W)[:, None]                 # input column
    w_idx = jnp.arange(W)[None, :]                  # output column
    kx = wi_idx - w_idx + 1                         # (W, W) tap index
    valid = (kx >= 0) & (kx <= kw - 1)
    kx_c = jnp.clip(kx, 0, kw - 1)
    sel = conv_w_hwio[:, kx_c]                      # (3, W, W, Ci, Co)
    band = jnp.where(valid[None, :, :, None, None], sel, 0.0)
    band = jnp.transpose(band, (0, 1, 3, 2, 4))     # (ky, wi, Ci, w, Co)
    return band.reshape(kh * W * Ci, W * Co)


def prepare_block_params(gamma, beta, conv_w_hwio, conv_b, *, W, groups):
    """One-time (per-weights) host-side preprocessing; call outside the hot path."""
    _, _, C, Co = conv_w_hwio.shape
    G = groups
    Cg = C // G
    WC, WCo = W * C, W * Co

    gamma_lane = jnp.tile(gamma.astype(jnp.float32), W).reshape(1, WC)
    beta_lane = jnp.tile(beta.astype(jnp.float32), W).reshape(1, WC)
    bias_lane = jnp.tile(conv_b.astype(jnp.float32), W).reshape(1, WCo)

    # block-diagonal lane<->group matrices for [sum | sumsq] / [inv | mean*inv]
    lane_ch = jnp.arange(WC) % C
    gmat = (lane_ch[:, None] // Cg == jnp.arange(G)[None, :]).astype(jnp.float32)
    gfwd = jnp.zeros((2 * WC, 2 * G), jnp.float32)
    gfwd = gfwd.at[:WC, :G].set(gmat).at[WC:, G:].set(gmat)
    gbwd = gfwd.T

    # banded conv weight (bf16 for the MXU; accumulation stays f32)
    wm_bf16 = _build_banded_weight(conv_w_hwio.astype(jnp.float32), W).astype(jnp.bfloat16)

    return (gamma_lane, beta_lane, gfwd, gbwd, wm_bf16, bias_lane)


def _default_batch_tile(B, H):
    """Stack samples so the conv matmul has ~256 rows; on 2-TC (v7x) chips keep an
    even number of grid steps so both TensorCores get work."""
    target_rows = 256
    bt = max(1, min(B, target_rows // max(H, 1)))
    while B % bt:
        bt -= 1
    try:
        kind = jax.devices()[0].device_kind.lower()
    except Exception:  # pragma: no cover
        kind = ""
    if "v7" in kind and (B // bt) % 2 == 1 and bt % 2 == 0:
        bt //= 2
    return bt


def block_forward(x_nhwc, params, *, groups, eps=1e-5, batch_tile=None,
                  out_dtype=jnp.float32):
    """x_nhwc: (B, H, W, C). params from prepare_block_params. Returns (B, H, W, Co)."""
    B, H, W, C = x_nhwc.shape
    gamma_lane, beta_lane, gfwd, gbwd, wm_bf16, bias_lane = params
    G = groups
    WC = W * C
    WCo = wm_bf16.shape[1]
    Co = WCo // W
    assert gamma_lane.shape[1] == WC

    Bt = batch_tile if batch_tile is not None else _default_batch_tile(B, H)
    assert B % Bt == 0, f"batch {B} not divisible by batch tile {Bt}"
    steps = B // Bt

    x2d = x_nhwc.astype(jnp.float32).reshape(B, H, WC)
    kernel = functools.partial(_block_kernel, Bt=Bt, H=H, WC=WC, WCo=WCo, G=G, eps=eps)

    def build_call(single_buffer_consts):
        const_kw = dict(pipeline_mode=pl.Buffered(1)) if single_buffer_consts else {}
        in_specs = [
            pl.BlockSpec((Bt, H, WC), lambda b: (b, 0, 0)),                 # x
            pl.BlockSpec((1, WC), lambda b: (0, 0), **const_kw),            # gamma
            pl.BlockSpec((1, WC), lambda b: (0, 0), **const_kw),            # beta
            pl.BlockSpec((2 * WC, 2 * G), lambda b: (0, 0), **const_kw),    # lane->group
            pl.BlockSpec((2 * G, 2 * WC), lambda b: (0, 0), **const_kw),    # group->lane
            pl.BlockSpec((3 * WC, WCo), lambda b: (0, 0), **const_kw),      # banded weight
            pl.BlockSpec((1, WCo), lambda b: (0, 0), **const_kw),           # bias
        ]
        return pl.pallas_call(
            kernel,
            out_shape=jax.ShapeDtypeStruct((B, H, WCo), out_dtype),
            grid_spec=pltpu.PrefetchScalarGridSpec(
                num_scalar_prefetch=0,
                grid=(steps,),
                in_specs=in_specs,
                out_specs=pl.BlockSpec((Bt, H, WCo), lambda b: (b, 0, 0)),
            ),
            compiler_params=pltpu.CompilerParams(
                dimension_semantics=("parallel",)),
        )

    args = (x2d, gamma_lane, beta_lane, gfwd, gbwd, wm_bf16, bias_lane)
    try:
        out2d = build_call(True)(*args)
    except Exception:
        # Installed Pallas without BlockSpec pipeline_mode support: fall back to
        # default (double-buffered) constant operands; semantics unchanged.
        out2d = build_call(False)(*args)

    return out2d.reshape(B, H, W, Co)


def block_reference(x_nhwc, gamma, beta, conv_w_hwio, conv_b, *, groups, eps=1e-5):
    """Pure-JAX f32 reference of GroupNorm -> Swish -> Conv2d(3x3, pad=1), NHWC."""
    B, H, W, C = x_nhwc.shape
    G = groups
    Cg = C // G
    xg = x_nhwc.reshape(B, H, W, G, Cg)
    mean = xg.mean(axis=(1, 2, 4), keepdims=True)
    var = ((xg - mean) ** 2).mean(axis=(1, 2, 4), keepdims=True)
    y = ((xg - mean) / jnp.sqrt(var + eps)).reshape(B, H, W, C)
    y = y * gamma.reshape(1, 1, 1, C) + beta.reshape(1, 1, 1, C)
    z = y * jax.nn.sigmoid(y)
    out = lax.conv_general_dilated(
        z, conv_w_hwio, window_strides=(1, 1), padding="SAME",
        dimension_numbers=("NHWC", "HWIO", "NHWC"))
    return out + conv_b.reshape(1, 1, 1, -1)


if __name__ == "__main__":
    # Small shapes consistent with the module: dim=8, dim_out=16, groups=4.
    B, H, W = 2, 16, 16
    dim, dim_out, groups = 8, 16, 4

    key = jax.random.PRNGKey(0)
    kx, kwt, kb, kg, kbe = jax.random.split(key, 5)

    # PyTorch-layout input (NCHW), transposed to NHWC for the kernel.
    x_nchw = jax.random.normal(kx, (B, dim, H, W), dtype=jnp.float32)
    x_nhwc = jnp.transpose(x_nchw, (0, 2, 3, 1))

    # Non-trivial GroupNorm affine params to exercise the full path.
    gamma = 1.0 + 0.1 * jax.random.normal(kg, (dim,), dtype=jnp.float32)
    beta = 0.1 * jax.random.normal(kbe, (dim,), dtype=jnp.float32)
    # Conv2d weight in PyTorch is (Co, Ci, 3, 3); build HWIO = (3, 3, Ci, Co).
    conv_w_oihw = 0.1 * jax.random.normal(kwt, (dim_out, dim, 3, 3), dtype=jnp.float32)
    conv_w_hwio = jnp.transpose(conv_w_oihw, (2, 3, 1, 0))
    conv_b = 0.1 * jax.random.normal(kb, (dim_out,), dtype=jnp.float32)

    # One-time weight preprocessing (hoisted out of the per-call path).
    params = prepare_block_params(gamma, beta, conv_w_hwio, conv_b, W=W, groups=groups)
    params = jax.block_until_ready(params)

    out = block_forward(x_nhwc, params, groups=groups)
    out = jax.block_until_ready(out)

    ref = block_reference(x_nhwc, gamma, beta, conv_w_hwio, conv_b, groups=groups)
    assert out.shape == (B, H, W, dim_out)
    # bf16 MXU conv + EUP approx-reciprocal sigmoid vs. pure-f32 reference:
    # expected worst-case deviation is a few 1e-3; 2e-2 keeps healthy margin.
    max_err = float(jnp.max(jnp.abs(out - ref)))
    assert jnp.allclose(out, ref, atol=2e-2, rtol=2e-2), max_err

    print("KERNEL_OK")
</pallas_src>

<mosaic_0001>
module attributes {stable_mosaic.version = 11 : i64} {
  func.func @_block_kernel(%arg0: i32, %arg1: memref<2x16x128xf32, #tpu.memory_space<vmem>>, %arg2: memref<1x128xf32, #tpu.memory_space<vmem>>, %arg3: memref<1x128xf32, #tpu.memory_space<vmem>>, %arg4: memref<256x8xf32, #tpu.memory_space<vmem>>, %arg5: memref<8x256xf32, #tpu.memory_space<vmem>>, %arg6: memref<384x256xbf16, #tpu.memory_space<vmem>>, %arg7: memref<1x256xf32, #tpu.memory_space<vmem>>, %arg8: memref<2x16x256xf32, #tpu.memory_space<vmem>>) attributes {dimension_semantics = [#tpu.dimension_semantics<parallel>], iteration_bounds = array<i64: 1>, scalar_prefetch = 0 : i64, scratch_operands = 0 : i64, tpu.core_type = #tpu.core_type<tc>, window_params = [{transform_indices = @transform_0, window_bounds = array<i64: 2, 16, 128>}, {pipeline_mode = #tpu.pipeline_mode<synchronous>, transform_indices = @transform_1, window_bounds = array<i64: 1, 128>}, {pipeline_mode = #tpu.pipeline_mode<synchronous>, transform_indices = @transform_2, window_bounds = array<i64: 1, 128>}, {pipeline_mode = #tpu.pipeline_mode<synchronous>, transform_indices = @transform_3, window_bounds = array<i64: 256, 8>}, {pipeline_mode = #tpu.pipeline_mode<synchronous>, transform_indices = @transform_4, window_bounds = array<i64: 8, 256>}, {pipeline_mode = #tpu.pipeline_mode<synchronous>, transform_indices = @transform_5, window_bounds = array<i64: 384, 256>}, {pipeline_mode = #tpu.pipeline_mode<synchronous>, transform_indices = @transform_6, window_bounds = array<i64: 1, 256>}, {transform_indices = @transform_7, window_bounds = array<i64: 2, 16, 256>}]} {
    %c0 = arith.constant 0 : index
    %c0_0 = arith.constant 0 : index
    %c0_1 = arith.constant 0 : index
    %0 = vector.load %arg1[%c0, %c0_0, %c0_1] : memref<2x16x128xf32, #tpu.memory_space<vmem>>, vector<2x16x128xf32>
    %cst = arith.constant dense<0.000000e+00> : vector<2x128xf32>
    %1 = vector.multi_reduction <add>, %0, %cst [1] : vector<2x16x128xf32> to vector<2x128xf32>
    %2 = arith.mulf %0, %0 : vector<2x16x128xf32>
    %cst_2 = arith.constant dense<0.000000e+00> : vector<2x128xf32>
    %3 = vector.multi_reduction <add>, %2, %cst_2 [1] : vector<2x16x128xf32> to vector<2x128xf32>
    %4 = tpu.concatenate %1, %3 in 1 : vector<2x128xf32>, vector<2x128xf32> -> vector<2x256xf32>
    %c0_3 = arith.constant 0 : index
    %c0_4 = arith.constant 0 : index
    %5 = vector.load %arg4[%c0_3, %c0_4] : memref<256x8xf32, #tpu.memory_space<vmem>>, vector<256x8xf32>
    %cst_5 = arith.constant dense<0.000000e+00> : vector<2x8xf32>
    %6 = tpu.matmul %4, %5, %cst_5 {dimension_numbers = #tpu.dot_dimension_numbers<[1], [0], [0], [1], [0, 0, 1, 1], [], []>} : vector<2x256xf32>, vector<256x8xf32>, vector<2x8xf32> -> vector<2x8xf32>
    %7 = vector.extract_strided_slice %6 {offsets = [0, 0], sizes = [2, 4], strides = [1, 1]} : vector<2x8xf32> to vector<2x4xf32>
    %cst_6 = arith.constant 5.120000e+02 : f32
    %8 = vector.broadcast %cst_6 : f32 to vector<2x4xf32>
    %9 = arith.divf %7, %8 : vector<2x4xf32>
    %10 = vector.extract_strided_slice %6 {offsets = [0, 4], sizes = [2, 4], strides = [1, 1]} : vector<2x8xf32> to vector<2x4xf32>
    %cst_7 = arith.constant 5.120000e+02 : f32
    %11 = vector.broadcast %cst_7 : f32 to vector<2x4xf32>
    %12 = arith.divf %10, %11 : vector<2x4xf32>
    %13 = arith.mulf %9, %9 : vector<2x4xf32>
    %14 = arith.subf %12, %13 : vector<2x4xf32>
    %cst_8 = arith.constant 0.000000e+00 : f32
    %15 = vector.broadcast %cst_8 : f32 to vector<2x4xf32>
    %16 = arith.maximumf %14, %15 : vector<2x4xf32>
    %cst_9 = arith.constant 9.99999974E-6 : f32
    %17 = vector.broadcast %cst_9 : f32 to vector<2x4xf32>
    %18 = arith.addf %16, %17 : vector<2x4xf32>
    %19 = math.rsqrt %18 : vector<2x4xf32>
    %20 = arith.mulf %9, %19 : vector<2x4xf32>
    %21 = tpu.concatenate %19, %20 in 1 : vector<2x4xf32>, vector<2x4xf32> -> vector<2x8xf32>
    %c0_10 = arith.constant 0 : index
    %c0_11 = arith.constant 0 : index
    %22 = vector.load %arg5[%c0_10, %c0_11] : memref<8x256xf32, #tpu.memory_space<vmem>>, vector<8x256xf32>
    %cst_12 = arith.constant dense<0.000000e+00> : vector<2x256xf32>
    %23 = tpu.matmul %21, %22, %cst_12 {dimension_numbers = #tpu.dot_dimension_numbers<[1], [0], [0], [1], [0, 0, 1, 1], [], []>} : vector<2x8xf32>, vector<8x256xf32>, vector<2x256xf32> -> vector<2x256xf32>
    %24 = vector.extract_strided_slice %23 {offsets = [0, 0], sizes = [2, 128], strides = [1, 1]} : vector<2x256xf32> to vector<2x128xf32>
    %25 = vector.shape_cast %24 : vector<2x128xf32> to vector<2x1x128xf32>
    %26 = vector.extract_strided_slice %23 {offsets = [0, 128], sizes = [2, 128], strides = [1, 1]} : vector<2x256xf32> to vector<2x128xf32>
    %27 = vector.shape_cast %26 : vector<2x128xf32> to vector<2x1x128xf32>
    %c0_13 = arith.constant 0 : index
    %c0_14 = arith.constant 0 : index
    %28 = vector.load %arg2[%c0_13, %c0_14] : memref<1x128xf32, #tpu.memory_space<vmem>>, vector<1x128xf32>
    %29 = vector.shape_cast %28 : vector<1x128xf32> to vector<1x1x128xf32>
    %30 = vector.broadcast %29 : vector<1x1x128xf32> to vector<2x1x128xf32>
    %31 = arith.mulf %30, %25 : vector<2x1x128xf32>
    %c0_15 = arith.constant 0 : index
    %c0_16 = arith.constant 0 : index
    %32 = vector.load %arg3[%c0_15, %c0_16] : memref<1x128xf32, #tpu.memory_space<vmem>>, vector<1x128xf32>
    %33 = vector.shape_cast %28 : vector<1x128xf32> to vector<1x1x128xf32>
    %34 = vector.broadcast %33 : vector<1x1x128xf32> to vector<2x1x128xf32>
    %35 = arith.mulf %34, %27 : vector<2x1x128xf32>
    %36 = vector.shape_cast %32 : vector<1x128xf32> to vector<1x1x128xf32>
    %37 = vector.broadcast %36 : vector<1x1x128xf32> to vector<2x1x128xf32>
    %38 = arith.subf %37, %35 : vector<2x1x128xf32>
    %39 = vector.broadcast %31 : vector<2x1x128xf32> to vector<2x16x128xf32>
    %40 = arith.mulf %0, %39 : vector<2x16x128xf32>
    %41 = vector.broadcast %38 : vector<2x1x128xf32> to vector<2x16x128xf32>
    %42 = arith.addf %40, %41 : vector<2x16x128xf32>
    %cst_17 = arith.constant 0.000000e+00 : f32
    %43 = vector.broadcast %cst_17 : f32 to vector<2x16x128xf32>
    %44 = arith.subf %43, %42 : vector<2x16x128xf32>
    %45 = math.exp %44 : vector<2x16x128xf32>
    %cst_18 = arith.constant 1.000000e+00 : f32
    %46 = vector.broadcast %cst_18 : f32 to vector<2x16x128xf32>
    %47 = arith.addf %46, %45 : vector<2x16x128xf32>
    %48 = tpu.reciprocal %47 {approx = true} : vector<2x16x128xf32> -> vector<2x16x128xf32>
    %49 = arith.mulf %42, %48 : vector<2x16x128xf32>
    %50 = vector.shape_cast %49 : vector<2x16x128xf32> to vector<32x128xf32>
    %51 = tpu.iota {dimensions = array<i32: 0>} : vector<32x1xi32>
    %c16_i32 = arith.constant 16 : i32
    %c0_i32 = arith.constant 0 : i32
    %52 = arith.cmpi eq, %c16_i32, %c0_i32 : i32
    %c1_i32 = arith.constant 1 : i32
    %53 = arith.select %52, %c1_i32, %c16_i32 : i32
    %54 = vector.broadcast %53 : i32 to vector<32x1xi32>
    %55 = arith.remsi %51, %54 : vector<32x1xi32>
    %c0_i32_19 = arith.constant 0 : i32
    %56 = vector.broadcast %c0_i32_19 : i32 to vector<32x1xi32>
    %57 = arith.cmpi ne, %55, %56 : vector<32x1xi32>
    %c0_i32_20 = arith.constant 0 : i32
    %58 = vector.broadcast %c0_i32_20 : i32 to vector<32x1xi32>
    %59 = arith.cmpi slt, %55, %58 : vector<32x1xi32>
    %c0_i32_21 = arith.constant 0 : i32
    %60 = arith.cmpi slt, %53, %c0_i32_21 : i32
    %61 = vector.broadcast %60 : i1 to vector<32x1xi1>
    %62 = vector.broadcast %61 : vector<32x1xi1> to vector<32x1xi1>
    %63 = arith.xori %59, %62 : vector<32x1xi1>
    %64 = arith.andi %63, %57 : vector<32x1xi1>
    %65 = vector.broadcast %53 : i32 to vector<32x1xi32>
    %66 = arith.addi %55, %65 : vector<32x1xi32>
    %67 = arith.select %64, %66, %55 : vector<32x1xi1>, vector<32x1xi32>
    %c0_i32_22 = arith.constant 0 : i32
    %68 = vector.broadcast %c0_i32_22 : i32 to vector<32x1xi32>
    %69 = arith.cmpi eq, %67, %68 : vector<32x1xi32>
    %c1_i32_23 = arith.constant 1 : i32
    %70 = tpu.dynamic_rotate %50 by %c1_i32_23 dim 0 : vector<32x128xf32>, i32 -> vector<32x128xf32>
    %cst_24 = arith.constant 0.000000e+00 : f32
    %71 = vector.shape_cast %69 : vector<32x1xi1> to vector<32x1xi1>
    %72 = vector.broadcast %71 : vector<32x1xi1> to vector<32x128xi1>
    %73 = vector.broadcast %cst_24 : f32 to vector<32x128xf32>
    %74 = arith.select %72, %73, %70 : vector<32x128xi1>, vector<32x128xf32>
    %c15_i32 = arith.constant 15 : i32
    %75 = vector.broadcast %c15_i32 : i32 to vector<32x1xi32>
    %76 = arith.cmpi eq, %67, %75 : vector<32x1xi32>
    %c31_i32 = arith.constant 31 : i32
    %77 = tpu.dynamic_rotate %50 by %c31_i32 dim 0 : vector<32x128xf32>, i32 -> vector<32x128xf32>
    %cst_25 = arith.constant 0.000000e+00 : f32
    %78 = vector.shape_cast %76 : vector<32x1xi1> to vector<32x1xi1>
    %79 = vector.broadcast %78 : vector<32x1xi1> to vector<32x128xi1>
    %80 = vector.broadcast %cst_25 : f32 to vector<32x128xf32>
    %81 = arith.select %79, %80, %77 : vector<32x128xi1>, vector<32x128xf32>
    %82 = arith.truncf %74 : vector<32x128xf32> to vector<32x128xbf16>
    %83 = arith.truncf %50 : vector<32x128xf32> to vector<32x128xbf16>
    %84 = arith.truncf %81 : vector<32x128xf32> to vector<32x128xbf16>
    %85 = tpu.concatenate %82, %83, %84 in 1 : vector<32x128xbf16>, vector<32x128xbf16>, vector<32x128xbf16> -> vector<32x384xbf16>
    %c0_26 = arith.constant 0 : index
    %c0_27 = arith.constant 0 : index
    %86 = vector.load %arg6[%c0_26, %c0_27] : memref<384x256xbf16, #tpu.memory_space<vmem>>, vector<384x256xbf16>
    %cst_28 = arith.constant dense<0.000000e+00> : vector<32x256xf32>
    %87 = tpu.matmul %85, %86, %cst_28 {dimension_numbers = #tpu.dot_dimension_numbers<[1], [0], [0], [1], [0, 0, 1, 1], [], []>} : vector<32x384xbf16>, vector<384x256xbf16>, vector<32x256xf32> -> vector<32x256xf32>
    %c0_29 = arith.constant 0 : index
    %c0_30 = arith.constant 0 : index
    %88 = vector.load %arg7[%c0_29, %c0_30] : memref<1x256xf32, #tpu.memory_space<vmem>>, vector<1x256xf32>
    %89 = vector.broadcast %88 : vector<1x256xf32> to vector<32x256xf32>
    %90 = arith.addf %87, %89 : vector<32x256xf32>
    %91 = vector.shape_cast %90 : vector<32x256xf32> to vector<2x16x256xf32>
    %c0_31 = arith.constant 0 : index
    %c0_32 = arith.constant 0 : index
    %c0_33 = arith.constant 0 : index
    %92 = vector.load %arg8[%c0_31, %c0_32, %c0_33] : memref<2x16x256xf32, #tpu.memory_space<vmem>>, vector<2x16x256xf32>
    tpu.vector_store %arg8[%c0_31, %c0_32, %c0_33], %91 {strides = array<i32>} : memref<2x16x256xf32, #tpu.memory_space<vmem>>, vector<2x16x256xf32>,
    return
  }
  func.func @transform_0(%arg0: i32) -> (i32, i32, i32) {
    %c0_i32 = arith.constant 0 : i32
    %c0_i32_0 = arith.constant 0 : i32
    %c0_i32_1 = arith.constant 0 : i32
    return %arg0, %c0_i32, %c0_i32_0 : i32, i32, i32
  }
  func.func @transform_1(%arg0: i32) -> (i32, i32) {
    %c0_i32 = arith.constant 0 : i32
    %c0_i32_0 = arith.constant 0 : i32
    %c0_i32_1 = arith.constant 0 : i32
    return %c0_i32, %c0_i32_0 : i32, i32
  }
  func.func @transform_2(%arg0: i32) -> (i32, i32) {
    %c0_i32 = arith.constant 0 : i32
    %c0_i32_0 = arith.constant 0 : i32
    %c0_i32_1 = arith.constant 0 : i32
    return %c0_i32, %c0_i32_0 : i32, i32
  }
  func.func @transform_3(%arg0: i32) -> (i32, i32) {
    %c0_i32 = arith.constant 0 : i32
    %c0_i32_0 = arith.constant 0 : i32
    %c0_i32_1 = arith.constant 0 : i32
    return %c0_i32, %c0_i32_0 : i32, i32
  }
  func.func @transform_4(%arg0: i32) -> (i32, i32) {
    %c0_i32 = arith.constant 0 : i32
    %c0_i32_0 = arith.constant 0 : i32
    %c0_i32_1 = arith.constant 0 : i32
    return %c0_i32, %c0_i32_0 : i32, i32
  }
  func.func @transform_5(%arg0: i32) -> (i32, i32) {
    %c0_i32 = arith.constant 0 : i32
    %c0_i32_0 = arith.constant 0 : i32
    %c0_i32_1 = arith.constant 0 : i32
    return %c0_i32, %c0_i32_0 : i32, i32
  }
  func.func @transform_6(%arg0: i32) -> (i32, i32) {
    %c0_i32 = arith.constant 0 : i32
    %c0_i32_0 = arith.constant 0 : i32
    %c0_i32_1 = arith.constant 0 : i32
    return %c0_i32, %c0_i32_0 : i32, i32
  }
  func.func @transform_7(%arg0: i32) -> (i32, i32, i32) {
    %c0_i32 = arith.constant 0 : i32
    %c0_i32_0 = arith.constant 0 : i32
    %c0_i32_1 = arith.constant 0 : i32
    return %arg0, %c0_i32, %c0_i32_0 : i32, i32, i32
  }
}

module attributes {stable_mosaic.version = 11 : i64} {
  func.func @_block_kernel(%arg0: i32, %arg1: memref<2x16x128xf32, #tpu.memory_space<vmem>>, %arg2: memref<1x128xf32, #tpu.memory_space<vmem>>, %arg3: memref<1x128xf32, #tpu.memory_space<vmem>>, %arg4: memref<256x8xf32, #tpu.memory_space<vmem>>, %arg5: memref<8x256xf32, #tpu.memory_space<vmem>>, %arg6: memref<384x256xbf16, #tpu.memory_space<vmem>>, %arg7: memref<1x256xf32, #tpu.memory_space<vmem>>, %arg8: memref<2x16x256xf32, #tpu.memory_space<vmem>>) attributes {dimension_semantics = [#tpu.dimension_semantics<parallel>], iteration_bounds = array<i64: 1>, scalar_prefetch = 0 : i64, scratch_operands = 0 : i64, tpu.core_type = #tpu.core_type<tc>, window_params = [{transform_indices = @transform_0, window_bounds = array<i64: 2, 16, 128>}, {pipeline_mode = #tpu.pipeline_mode<synchronous>, transform_indices = @transform_1, window_bounds = array<i64: 1, 128>}, {pipeline_mode = #tpu.pipeline_mode<synchronous>, transform_indices = @transform_2, window_bounds = array<i64: 1, 128>}, {pipeline_mode = #tpu.pipeline_mode<synchronous>, transform_indices = @transform_3, window_bounds = array<i64: 256, 8>}, {pipeline_mode = #tpu.pipeline_mode<synchronous>, transform_indices = @transform_4, window_bounds = array<i64: 8, 256>}, {pipeline_mode = #tpu.pipeline_mode<synchronous>, transform_indices = @transform_5, window_bounds = array<i64: 384, 256>}, {pipeline_mode = #tpu.pipeline_mode<synchronous>, transform_indices = @transform_6, window_bounds = array<i64: 1, 256>}, {transform_indices = @transform_7, window_bounds = array<i64: 2, 16, 256>}]} {
    %c0 = arith.constant 0 : index
    %c0_0 = arith.constant 0 : index
    %c0_1 = arith.constant 0 : index
    %0 = vector.load %arg1[%c0, %c0_0, %c0_1] : memref<2x16x128xf32, #tpu.memory_space<vmem>>, vector<2x16x128xf32>
    %cst = arith.constant dense<0.000000e+00> : vector<2x128xf32>
    %1 = vector.multi_reduction <add>, %0, %cst [1] : vector<2x16x128xf32> to vector<2x128xf32>
    %2 = arith.mulf %0, %0 : vector<2x16x128xf32>
    %cst_2 = arith.constant dense<0.000000e+00> : vector<2x128xf32>
    %3 = vector.multi_reduction <add>, %2, %cst_2 [1] : vector<2x16x128xf32> to vector<2x128xf32>
    %4 = tpu.concatenate %1, %3 in 1 : vector<2x128xf32>, vector<2x128xf32> -> vector<2x256xf32>
    %c0_3 = arith.constant 0 : index
    %c0_4 = arith.constant 0 : index
    %5 = vector.load %arg4[%c0_3, %c0_4] : memref<256x8xf32, #tpu.memory_space<vmem>>, vector<256x8xf32>
    %cst_5 = arith.constant dense<0.000000e+00> : vector<2x8xf32>
    %6 = tpu.matmul %4, %5, %cst_5 {dimension_numbers = #tpu.dot_dimension_numbers<[1], [0], [0], [1], [0, 0, 1, 1], [], []>} : vector<2x256xf32>, vector<256x8xf32>, vector<2x8xf32> -> vector<2x8xf32>
    %7 = vector.extract_strided_slice %6 {offsets = [0, 0], sizes = [2, 4], strides = [1, 1]} : vector<2x8xf32> to vector<2x4xf32>
    %cst_6 = arith.constant 5.120000e+02 : f32
    %8 = vector.broadcast %cst_6 : f32 to vector<2x4xf32>
    %9 = arith.divf %7, %8 : vector<2x4xf32>
    %10 = vector.extract_strided_slice %6 {offsets = [0, 4], sizes = [2, 4], strides = [1, 1]} : vector<2x8xf32> to vector<2x4xf32>
    %cst_7 = arith.constant 5.120000e+02 : f32
    %11 = vector.broadcast %cst_7 : f32 to vector<2x4xf32>
    %12 = arith.divf %10, %11 : vector<2x4xf32>
    %13 = arith.mulf %9, %9 : vector<2x4xf32>
    %14 = arith.subf %12, %13 : vector<2x4xf32>
    %cst_8 = arith.constant 0.000000e+00 : f32
    %15 = vector.broadcast %cst_8 : f32 to vector<2x4xf32>
    %16 = arith.maximumf %14, %15 : vector<2x4xf32>
    %cst_9 = arith.constant 9.99999974E-6 : f32
    %17 = vector.broadcast %cst_9 : f32 to vector<2x4xf32>
    %18 = arith.addf %16, %17 : vector<2x4xf32>
    %19 = math.rsqrt %18 : vector<2x4xf32>
    %20 = arith.mulf %9, %19 : vector<2x4xf32>
    %21 = tpu.concatenate %19, %20 in 1 : vector<2x4xf32>, vector<2x4xf32> -> vector<2x8xf32>
    %c0_10 = arith.constant 0 : index
    %c0_11 = arith.constant 0 : index
    %22 = vector.load %arg5[%c0_10, %c0_11] : memref<8x256xf32, #tpu.memory_space<vmem>>, vector<8x256xf32>
    %cst_12 = arith.constant dense<0.000000e+00> : vector<2x256xf32>
    %23 = tpu.matmul %21, %22, %cst_12 {dimension_numbers = #tpu.dot_dimension_numbers<[1], [0], [0], [1], [0, 0, 1, 1], [], []>} : vector<2x8xf32>, vector<8x256xf32>, vector<2x256xf32> -> vector<2x256xf32>
    %24 = vector.extract_strided_slice %23 {offsets = [0, 0], sizes = [2, 128], strides = [1, 1]} : vector<2x256xf32> to vector<2x128xf32>
    %25 = vector.shape_cast %24 : vector<2x128xf32> to vector<2x1x128xf32>
    %26 = vector.extract_strided_slice %23 {offsets = [0, 128], sizes = [2, 128], strides = [1, 1]} : vector<2x256xf32> to vector<2x128xf32>
    %27 = vector.shape_cast %26 : vector<2x128xf32> to vector<2x1x128xf32>
    %c0_13 = arith.constant 0 : index
    %c0_14 = arith.constant 0 : index
    %28 = vector.load %arg2[%c0_13, %c0_14] : memref<1x128xf32, #tpu.memory_space<vmem>>, vector<1x128xf32>
    %29 = vector.shape_cast %28 : vector<1x128xf32> to vector<1x1x128xf32>
    %30 = vector.broadcast %29 : vector<1x1x128xf32> to vector<2x1x128xf32>
    %31 = arith.mulf %30, %25 : vector<2x1x128xf32>
    %c0_15 = arith.constant 0 : index
    %c0_16 = arith.constant 0 : index
    %32 = vector.load %arg3[%c0_15, %c0_16] : memref<1x128xf32, #tpu.memory_space<vmem>>, vector<1x128xf32>
    %33 = vector.shape_cast %28 : vector<1x128xf32> to vector<1x1x128xf32>
    %34 = vector.broadcast %33 : vector<1x1x128xf32> to vector<2x1x128xf32>
    %35 = arith.mulf %34, %27 : vector<2x1x128xf32>
    %36 = vector.shape_cast %32 : vector<1x128xf32> to vector<1x1x128xf32>
    %37 = vector.broadcast %36 : vector<1x1x128xf32> to vector<2x1x128xf32>
    %38 = arith.subf %37, %35 : vector<2x1x128xf32>
    %39 = vector.broadcast %31 : vector<2x1x128xf32> to vector<2x16x128xf32>
    %40 = arith.mulf %0, %39 : vector<2x16x128xf32>
    %41 = vector.broadcast %38 : vector<2x1x128xf32> to vector<2x16x128xf32>
    %42 = arith.addf %40, %41 : vector<2x16x128xf32>
    %cst_17 = arith.constant 0.000000e+00 : f32
    %43 = vector.broadcast %cst_17 : f32 to vector<2x16x128xf32>
    %44 = arith.subf %43, %42 : vector<2x16x128xf32>
    %45 = math.exp %44 : vector<2x16x128xf32>
    %cst_18 = arith.constant 1.000000e+00 : f32
    %46 = vector.broadcast %cst_18 : f32 to vector<2x16x128xf32>
    %47 = arith.addf %46, %45 : vector<2x16x128xf32>
    %48 = tpu.reciprocal %47 {approx = true} : vector<2x16x128xf32> -> vector<2x16x128xf32>
    %49 = arith.mulf %42, %48 : vector<2x16x128xf32>
    %50 = vector.shape_cast %49 : vector<2x16x128xf32> to vector<32x128xf32>
    %51 = tpu.iota {dimensions = array<i32: 0>} : vector<32x1xi32>
    %c16_i32 = arith.constant 16 : i32
    %c0_i32 = arith.constant 0 : i32
    %52 = arith.cmpi eq, %c16_i32, %c0_i32 : i32
    %c1_i32 = arith.constant 1 : i32
    %53 = arith.select %52, %c1_i32, %c16_i32 : i32
    %54 = vector.broadcast %53 : i32 to vector<32x1xi32>
    %55 = arith.remsi %51, %54 : vector<32x1xi32>
    %c0_i32_19 = arith.constant 0 : i32
    %56 = vector.broadcast %c0_i32_19 : i32 to vector<32x1xi32>
    %57 = arith.cmpi ne, %55, %56 : vector<32x1xi32>
    %c0_i32_20 = arith.constant 0 : i32
    %58 = vector.broadcast %c0_i32_20 : i32 to vector<32x1xi32>
    %59 = arith.cmpi slt, %55, %58 : vector<32x1xi32>
    %c0_i32_21 = arith.constant 0 : i32
    %60 = arith.cmpi slt, %53, %c0_i32_21 : i32
    %61 = vector.broadcast %60 : i1 to vector<32x1xi1>
    %62 = vector.broadcast %61 : vector<32x1xi1> to vector<32x1xi1>
    %63 = arith.xori %59, %62 : vector<32x1xi1>
    %64 = arith.andi %63, %57 : vector<32x1xi1>
    %65 = vector.broadcast %53 : i32 to vector<32x1xi32>
    %66 = arith.addi %55, %65 : vector<32x1xi32>
    %67 = arith.select %64, %66, %55 : vector<32x1xi1>, vector<32x1xi32>
    %c0_i32_22 = arith.constant 0 : i32
    %68 = vector.broadcast %c0_i32_22 : i32 to vector<32x1xi32>
    %69 = arith.cmpi eq, %67, %68 : vector<32x1xi32>
    %c1_i32_23 = arith.constant 1 : i32
    %70 = tpu.dynamic_rotate %50 by %c1_i32_23 dim 0 : vector<32x128xf32>, i32 -> vector<32x128xf32>
    %cst_24 = arith.constant 0.000000e+00 : f32
    %71 = vector.shape_cast %69 : vector<32x1xi1> to vector<32x1xi1>
    %72 = vector.broadcast %71 : vector<32x1xi1> to vector<32x128xi1>
    %73 = vector.broadcast %cst_24 : f32 to vector<32x128xf32>
    %74 = arith.select %72, %73, %70 : vector<32x128xi1>, vector<32x128xf32>
    %c15_i32 = arith.constant 15 : i32
    %75 = vector.broadcast %c15_i32 : i32 to vector<32x1xi32>
    %76 = arith.cmpi eq, %67, %75 : vector<32x1xi32>
    %c31_i32 = arith.constant 31 : i32
    %77 = tpu.dynamic_rotate %50 by %c31_i32 dim 0 : vector<32x128xf32>, i32 -> vector<32x128xf32>
    %cst_25 = arith.constant 0.000000e+00 : f32
    %78 = vector.shape_cast %76 : vector<32x1xi1> to vector<32x1xi1>
    %79 = vector.broadcast %78 : vector<32x1xi1> to vector<32x128xi1>
    %80 = vector.broadcast %cst_25 : f32 to vector<32x128xf32>
    %81 = arith.select %79, %80, %77 : vector<32x128xi1>, vector<32x128xf32>
    %82 = arith.truncf %74 : vector<32x128xf32> to vector<32x128xbf16>
    %83 = arith.truncf %50 : vector<32x128xf32> to vector<32x128xbf16>
    %84 = arith.truncf %81 : vector<32x128xf32> to vector<32x128xbf16>
    %85 = tpu.concatenate %82, %83, %84 in 1 : vector<32x128xbf16>, vector<32x128xbf16>, vector<32x128xbf16> -> vector<32x384xbf16>
    %c0_26 = arith.constant 0 : index
    %c0_27 = arith.constant 0 : index
    %86 = vector.load %arg6[%c0_26, %c0_27] : memref<384x256xbf16, #tpu.memory_space<vmem>>, vector<384x256xbf16>
    %cst_28 = arith.constant dense<0.000000e+00> : vector<32x256xf32>
    %87 = tpu.matmul %85, %86, %cst_28 {dimension_numbers = #tpu.dot_dimension_numbers<[1], [0], [0], [1], [0, 0, 1, 1], [], []>} : vector<32x384xbf16>, vector<384x256xbf16>, vector<32x256xf32> -> vector<32x256xf32>
    %c0_29 = arith.constant 0 : index
    %c0_30 = arith.constant 0 : index
    %88 = vector.load %arg7[%c0_29, %c0_30] : memref<1x256xf32, #tpu.memory_space<vmem>>, vector<1x256xf32>
    %89 = vector.broadcast %88 : vector<1x256xf32> to vector<32x256xf32>
    %90 = arith.addf %87, %89 : vector<32x256xf32>
    %91 = vector.shape_cast %90 : vector<32x256xf32> to vector<2x16x256xf32>
    %c0_31 = arith.constant 0 : index
    %c0_32 = arith.constant 0 : index
    %c0_33 = arith.constant 0 : index
    %92 = vector.load %arg8[%c0_31, %c0_32, %c0_33] : memref<2x16x256xf32, #tpu.memory_space<vmem>>, vector<2x16x256xf32>
    tpu.vector_store %arg8[%c0_31, %c0_32, %c0_33], %91 {strides = array<i32>} : memref<2x16x256xf32, #tpu.memory_space<vmem>>, vector<2x16x256xf32>,
    return
  }
  func.func @transform_0(%arg0: i32) -> (i32, i32, i32) {
    %c0_i32 = arith.constant 0 : i32
    %c0_i32_0 = arith.constant 0 : i32
    %c0_i32_1 = arith.constant 0 : i32
    return %arg0, %c0_i32, %c0_i32_0 : i32, i32, i32
  }
  func.func @transform_1(%arg0: i32) -> (i32, i32) {
    %c0_i32 = arith.constant 0 : i32
    %c0_i32_0 = arith.constant 0 : i32
    %c0_i32_1 = arith.constant 0 : i32
    return %c0_i32, %c0_i32_0 : i32, i32
  }
  func.func @transform_2(%arg0: i32) -> (i32, i32) {
    %c0_i32 = arith.constant 0 : i32
    %c0_i32_0 = arith.constant 0 : i32
    %c0_i32_1 = arith.constant 0 : i32
    return %c0_i32, %c0_i32_0 : i32, i32
  }
  func.func @transform_3(%arg0: i32) -> (i32, i32) {
    %c0_i32 = arith.constant 0 : i32
    %c0_i32_0 = arith.constant 0 : i32
    %c0_i32_1 = arith.constant 0 : i32
    return %c0_i32, %c0_i32_0 : i32, i32
  }
  func.func @transform_4(%arg0: i32) -> (i32, i32) {
    %c0_i32 = arith.constant 0 : i32
    %c0_i32_0 = arith.constant 0 : i32
    %c0_i32_1 = arith.constant 0 : i32
    return %c0_i32, %c0_i32_0 : i32, i32
  }
  func.func @transform_5(%arg0: i32) -> (i32, i32) {
    %c0_i32 = arith.constant 0 : i32
    %c0_i32_0 = arith.constant 0 : i32
    %c0_i32_1 = arith.constant 0 : i32
    return %c0_i32, %c0_i32_0 : i32, i32
  }
  func.func @transform_6(%arg0: i32) -> (i32, i32) {
    %c0_i32 = arith.constant 0 : i32
    %c0_i32_0 = arith.constant 0 : i32
    %c0_i32_1 = arith.constant 0 : i32
    return %c0_i32, %c0_i32_0 : i32, i32
  }
  func.func @transform_7(%arg0: i32) -> (i32, i32, i32) {
    %c0_i32 = arith.constant 0 : i32
    %c0_i32_0 = arith.constant 0 : i32
    %c0_i32_1 = arith.constant 0 : i32
    return %arg0, %c0_i32, %c0_i32_0 : i32, i32, i32
  }
}

</mosaic_0001>

<bundles_post_ra>
// kernel: tpu_custom_call.1
= control target key start
LH: loop header
LB: loop body
LE: loop exit
PB: predicated region body
PF: predicated region fallthrough
CT: control target
= control target key end

     0   :  { %12 = vsyncpa [#allocation3], 0  ;;  %s1443_s0 = inlined_call_operand.vmem [shape: f32[2,16,128], index: 0, kind: input, shape index: {}]   ;;  %s1444_s1 = inlined_call_operand.vmem [shape: f32[1,128], index: 1, kind: input, shape index: {}]   ;;  %s1445_s2 = inlined_call_operand.vmem [shape: f32[1,128], index: 2, kind: input, shape index: {}]   ;;  %s1446_s3 = inlined_call_operand.vmem [shape: f32[256,8], index: 3, kind: input, shape index: {}]   ;;  %s1447_s4 = inlined_call_operand.vmem [shape: f32[8,256], index: 4, kind: input, shape index: {}]   ;;  %s1448_s5 = inlined_call_operand.hbm [shape: bf16[384,256], index: 5, kind: input, shape index: {}]   ;;  %s1449_s6 = inlined_call_operand.vmem [shape: f32[1,256], index: 6, kind: input, shape index: {}]   ;;  %s1450_s7 = inlined_call_operand.hbm [shape: f32[2,16,256], index: 7, kind: output, shape index: {}]  }
   0x1   :  { %13 = vsyncpa [#allocation4], 0  ;;  %s1192_s24 = smov [#allocation2]  }
   0x2   :  { %s29_s25 = sshll.u32 %s1192_s24, 4  ;;  %s30_s25 = int_to_ptr.vmem [resolvable:$true] %s29_s25 }
   0x3   :  { %s1156_s26 = scalar_lea.vmem %s30_s25, 6144  ;;  %p1161_p1 = scmp.lt.s32.totalorder %s30_s25, %s30_s25 }
   0x4   :  { %p1157_p0 = scmp.ne.s32.totalorder %s30_s25, %s1156_s26  ;;  %p1162_p2 = scmp.lt.s32.totalorder %s1156_s26, %s1156_s26 }
   0x6   :  { %p1163_p3 = por %p1162_p2, %p1161_p1 }
   0x8   :  { %p1164_p4 = pnand %p1163_p3, %p1157_p0 }
   0xa   :  { %1167 = shalt.err (!%p1164_p4)
}
   0xb   :  { %s1193_s27 = smov 128   ;;  %s1194_s28 = smov 8  }
   0xc   :  { %35 = dma.hbm_to_vmem [thread:$0]  %s1448_s5, 6144, %s30_s25, [#allocation3], %s1193_s27, %s1193_s27, %s1194_s28  }
   0xd   :  { %1188 = dma.done.wait [#allocation3], 6144  }
   0xe   :  { %1189 = vsyncadd [#allocation3], 4294961152  ;;  %v118_v0 = vld [vmem:[%s1446_s3 + $0xf8] sm:$0xff]  ;;  %v117_v2 = vld [vmem:[%s1446_s3 + $0xf0] sm:$0xff]  ;;  %vm80_vm0 = vcmask 1041409   ;;  %s1195_s29 = smov 4  }
   0xf   :  { %v102_v1 = vld [vmem:[%s1446_s3 + $0x78] sm:$0xff]  ;;  %1011 = vmatprep.subr.mxu0 %v118_v0  ;;  %v101_v3 = vld [vmem:[%s1446_s3 + $0x70] sm:$0xff]  ;;  %v116_v4 = vld [vmem:[%s1446_s3 + $0xe8] sm:$0xff]  ;;  %s1196_s8 = smov 124   ;;  %vm209_vm1 = vcmask 31744   ;;  %vm213_vm2 = vcmask 64512  }
  0x10   :  { %1012 = vmatpush3.msra.mxu0 %v102_v1  ;;  %v100_v5 = vld [vmem:[%s1446_s3 + $0x68] sm:$0xff]  ;;  %v115_v6 = vld [vmem:[%s1446_s3 + $0xe0] sm:$0xff]  ;;  %v114_v8 = vld [vmem:[%s1446_s3 + $0xd8] sm:$0xff]  ;;  %vm1200_vm7 = vmmov 1  }
  0x11   :  { %1013 = vmatprep.subr.mxu0 %v117_v2  ;;  %v99_v7 = vld [vmem:[%s1446_s3 + $0x60] sm:$0xff]  ;;  %v98_v9 = vld [vmem:[%s1446_s3 + $0x58] sm:$0xff]  ;;  %v113_v10 = vld [vmem:[%s1446_s3 + $0xd0] sm:$0xff] }
  0x12   :  { %1014 = vmatpush3.msra.mxu0 %v101_v3  ;;  %v97_v11 = vld [vmem:[%s1446_s3 + $0x50] sm:$0xff]  ;;  %v112_v12 = vld [vmem:[%s1446_s3 + $0xc8] sm:$0xff]  ;;  %v111_v14 = vld [vmem:[%s1446_s3 + $0xc0] sm:$0xff] }
  0x13   :  { %1015 = vmatprep.subr.mxu0 %v116_v4  ;;  %v96_v13 = vld [vmem:[%s1446_s3 + $0x48] sm:$0xff]  ;;  %v1295_v15 = vld [vmem:[%s1443_s0] sm:$0xff]  ;;  %v1308_v18 = vld [vmem:[%s1443_s0 + $0x10] sm:$0xff] }
  0x14   :  { %1016 = vmatpush3.msra.mxu0 %v100_v5  ;;  %v95_v16 = vld [vmem:[%s1446_s3 + $0x40] sm:$0xff]  ;;  %v1303_v17 = vld [vmem:[%s1443_s0 + $0x8] sm:$0xff]  ;;  %v1313_v19 = vld [vmem:[%s1443_s0 + $0x18] sm:$0xff]  ;;  %v60_v20 = vmul.f32 %v1295_v15, %v1295_v15  ;;  %v62_v23 = vmul.f32 %v1308_v18, %v1308_v18 }
  0x15   :  { %1017 = vmatprep.subr.mxu0 %v115_v6  ;;  %v110_v21 = vld [vmem:[%s1446_s3 + $0xb8] sm:$0xff]  ;;  %v61_v22 = vmul.f32 %v1303_v17, %v1303_v17  ;;  %v63_v24 = vmul.f32 %v1313_v19, %v1313_v19  ;;  %v46_v25 = vadd.f32 %v1303_v17, %v1295_v15  ;;  %v53_v27 = vadd.f32 %v1313_v19, %v1308_v18  ;;  %v109_v28 = vld [vmem:[%s1446_s3 + $0xb0] sm:$0xff]  ;;  %v108_v34 = vld [vmem:[%s1446_s3 + $0xa8] sm:$0xff] }
  0x16   :  { %1018 = vmatpush3.msra.mxu0 %v99_v7  ;;  %v94_v26 = vld [vmem:[%s1446_s3 + $0x38] sm:$0xff]  ;;  %v93_v32 = vld [vmem:[%s1446_s3 + $0x30] sm:$0xff]  ;;  %v92_v38 = vld [vmem:[%s1446_s3 + $0x28] sm:$0xff] }
  0x17   :  { %1019 = vmatprep.subr.mxu0 %v114_v8  ;;  %v64_v29 = vadd.f32 %v61_v22, %v60_v20  ;;  %v71_v30 = vadd.f32 %v63_v24, %v62_v23  ;;  %v47_v31 = vrot.slane %v46_v25, 4  ;;  %v54_v33 = vrot.slane %v53_v27, 4  ;;  %v107_v40 = vld [vmem:[%s1446_s3 + $0xa0] sm:$0xff]  ;;  %v106_v46 = vld [vmem:[%s1446_s3 + $0x98] sm:$0xff]  ;;  %v105_v52 = vld [vmem:[%s1446_s3 + $0x90] sm:$0xff] }
  0x18   :  { %1020 = vmatpush3.msra.mxu0 %v98_v9  ;;  %v91_v44 = vld [vmem:[%s1446_s3 + $0x20] sm:$0xff]  ;;  %v90_v50 = vld [vmem:[%s1446_s3 + $0x18] sm:$0xff]  ;;  %v89_v56 = vld [vmem:[%s1446_s3 + $0x10] sm:$0xff]  ;;  %v1197_v22 = vmov 0.0  }
  0x19   :  { %1021 = vmatprep.subr.mxu0 %v113_v10  ;;  %v65_v35 = vrot.slane %v64_v29, 4  ;;  %v72_v36 = vrot.slane %v71_v30, 4  ;;  %v48_v37 = vadd.f32 %v47_v31, %v46_v25  ;;  %v55_v39 = vadd.f32 %v54_v33, %v53_v27  ;;  %v104_v58 = vld [vmem:[%s1446_s3 + $0x88] sm:$0xff]  ;;  %v103_v2 = vld [vmem:[%s1446_s3 + $0x80] sm:$0xff]  ;;  %281 = vmatprep.mubr.f32.mxu1 %v1197_v22  ;;  %v1060_v23 = vld [vmem:[#allocation2 + $0x74] ss:$8 sps:$4 sm:$0xff]  }
  0x1a   :  { %1022 = vmatpush3.msra.mxu0 %v97_v11  ;;  %v88_v61 = vld [vmem:[%s1446_s3 + $0x8] sm:$0xff]  ;;  %v87_v4 = vld [vmem:[%s1446_s3] sm:$0xff]  ;;  %v1066_v31 = vld [vmem:[#allocation2 + $0x54] ss:$8 sps:$4 sm:$0xff]  }
  0x1b   :  { %1023 = vmatprep.subr.mxu0 %v112_v12  ;;  %v66_v41 = vadd.f32 %v65_v35, %v64_v29  ;;  %v73_v42 = vadd.f32 %v72_v36, %v71_v30  ;;  %v49_v43 = vrot.slane %v48_v37, 2  ;;  %v56_v45 = vrot.slane %v55_v39, 2  ;;  %v1061_v30 = vld [vmem:[#allocation2 + $0x60] ss:$8 sps:$4 sm:$0xff]   ;;  %v1069_v33 = vld [vmem:[#allocation2 + $0x44] ss:$8 sps:$4 sm:$0xff]  }
  0x1c   :  { %1024 = vmatpush3.msra.mxu0 %v96_v13  ;;  %v1072_v35 = vld [vmem:[#allocation2 + $0x34] ss:$8 sps:$4 sm:$0xff]   ;;  %v1070_v36 = vld [vmem:[#allocation2 + $0x30] ss:$8 sps:$4 sm:$0xff]  }
  0x1d   :  { %1025 = vmatprep.subr.mxu0 %v111_v14  ;;  %v67_v47 = vrot.slane %v66_v41, 2  ;;  %v74_v48 = vrot.slane %v73_v42, 2  ;;  %v50_v49 = vadd.f32 %v49_v43, %v48_v37  ;;  %v57_v51 = vadd.f32 %v56_v45, %v55_v39  ;;  %v1075_v37 = vld [vmem:[#allocation2 + $0x24] ss:$8 sps:$4 sm:$0xff]   ;;  %v1078_v39 = vld [vmem:[#allocation2 + $0x14] ss:$8 sps:$4 sm:$0xff]  }
  0x1e   :  { %1026 = vmatpush3.msra.mxu0 %v95_v16  ;;  %v212_v16 = vld [vmem:[%s1447_s4 + $0x8] sm:$0xff]  ;;  %v1084_v43 = vld [vmem:[#allocation2 + $0xf4] ss:$8 sps:$4 sm:$0xff]   ;;  %v1082_v45 = vld [vmem:[#allocation2 + $0xf0] ss:$8 sps:$4 sm:$0xff]  }
  0x1f   :  { %1027 = vmatprep.subr.mxu0 %v110_v21  ;;  %v68_v53 = vadd.f32 %v67_v47, %v66_v41  ;;  %v75_v54 = vadd.f32 %v74_v48, %v73_v42  ;;  %v51_v55 = vrot.slane %v50_v49, 1  ;;  %v58_v57 = vrot.slane %v57_v51, 1  ;;  %247 = vmatprep.subr.mxu1 %v212_v16  ;;  %v211_v21 = vld [vmem:[%s1447_s4] sm:$0xff] }
  0x20   :  { %1028 = vmatpush3.msra.mxu0 %v94_v26  ;;  %248 = vmatpush1.msra.mxu1 %v211_v21  ;;  %v1058_v26 = vld [vmem:[#allocation2 + $0x70] ss:$8 sps:$4 sm:$0xff]   ;;  %v1081_v41 = vld [vmem:[#allocation2 + $0x4] ss:$8 sps:$4 sm:$0xff]   ;;  %v1079_v42 = vld [vmem:[#allocation2] ss:$8 sps:$4 sm:$0xff]  }
  0x21   :  { %1029 = vmatprep.subr.mxu0 %v109_v28  ;;  %v69_v59 = vrot.slane %v68_v53, 1  ;;  %v76_v60 = vrot.slane %v75_v54, 1  ;;  %v52_v0 = vadd.f32 %v51_v55, %v50_v49  ;;  %v59_v1 = vadd.f32 %v58_v57, %v57_v51  ;;  %811 = vmatprep.subr.bf16.mxu1 %v1060_v23  ;;  %v1063_v28 = vld [vmem:[#allocation2 + $0x64] ss:$8 sps:$4 sm:$0xff]   ;;  %v1088_v49 = vld [vmem:[#allocation2 + $0xe0] ss:$8 sps:$4 sm:$0xff]  }
  0x22   :  { %1030 = vmatpush3.msra.mxu0 %v93_v32  ;;  %v1064_v32 = vld [vmem:[#allocation2 + $0x50] ss:$8 sps:$4 sm:$0xff]   ;;  %v1090_v47 = vld [vmem:[#allocation2 + $0xe4] ss:$8 sps:$4 sm:$0xff]   ;;  %v1096_v51 = vld [vmem:[#allocation2 + $0xd4] ss:$8 sps:$4 sm:$0xff]  }
  0x23   :  { %1031 = vmatprep.subr.mxu0 %v108_v34  ;;  %v70_v62 = vadd.f32 %v69_v59, %v68_v53  ;;  %v77_v63 = vadd.f32 %v76_v60, %v75_v54  ;;  %v81_v5 = vsel %vm80_vm0, %v59_v1, %v52_v0  ;;  %v1067_v34 = vld [vmem:[#allocation2 + $0x40] ss:$8 sps:$4 sm:$0xff]   ;;  %v1093_v48 = vld [vmem:[#allocation2 + $0x164] ss:$8 sps:$4 sm:$0xff]   ;;  %v1094_v53 = vld [vmem:[#allocation2 + $0xd0] ss:$8 sps:$4 sm:$0xff]  }
  0x24   :  { %1032 = vmatpush3.msra.mxu0 %v92_v38  ;;  %v1073_v38 = vld [vmem:[#allocation2 + $0x20] ss:$8 sps:$4 sm:$0xff]   ;;  %v1097_v54 = vld [vmem:[#allocation2 + $0x150] ss:$8 sps:$4 sm:$0xff]   ;;  %v1102_v55 = vld [vmem:[#allocation2 + $0xc4] ss:$8 sps:$4 sm:$0xff]  }
  0x25   :  { %1033 = vmatprep.subr.mxu0 %v107_v40  ;;  %v85_v3 = vsel %vm80_vm0, %v77_v63, %v70_v62  ;;  %v1076_v40 = vld [vmem:[#allocation2 + $0x10] ss:$8 sps:$4 sm:$0xff]   ;;  %v1100_v57 = vld [vmem:[#allocation2 + $0xc0] ss:$8 sps:$4 sm:$0xff]   ;;  %v1108_v59 = vld [vmem:[#allocation2 + $0xb4] ss:$8 sps:$4 sm:$0xff]  }
  0x26   :  { %1034 = vmatpush3.msra.mxu0 %v91_v44  ;;  %183 = vmatprep.mubr.f32.mxu0 %v85_v3  ;;  %v1087_v44 = vld [vmem:[#allocation2 + $0x174] ss:$8 sps:$4 sm:$0xff]   ;;  %v1109_v62 = vld [vmem:[#allocation2 + $0x130] ss:$8 sps:$4 sm:$0xff]   ;;  %v1114_v63 = vld [vmem:[#allocation2 + $0xa4] ss:$8 sps:$4 sm:$0xff]  }
  0x27   :  { %1035 = vmatprep.subr.mxu0 %v106_v46  ;;  %v1085_v46 = vld [vmem:[#allocation2 + $0x170] ss:$8 sps:$4 sm:$0xff]   ;;  %v1111_v60 = vld [vmem:[#allocation2 + $0x134] ss:$8 sps:$4 sm:$0xff]   ;;  %v1117_v0 = vld [vmem:[#allocation2 + $0x124] ss:$8 sps:$4 sm:$0xff]  }
  0x28   :  { %1036 = vmatpush3.msra.mxu0 %v90_v50  ;;  %v1091_v50 = vld [vmem:[#allocation2 + $0x160] ss:$8 sps:$4 sm:$0xff]   ;;  %v1120_v3 = vld [vmem:[#allocation2 + $0x94] ss:$8 sps:$4 sm:$0xff]  }
  0x29   :  { %1037 = vmatprep.subr.mxu0 %v105_v52  ;;  %v1099_v52 = vld [vmem:[#allocation2 + $0x154] ss:$8 sps:$4 sm:$0xff]   ;;  %v1112_v1 = vld [vmem:[#allocation2 + $0xa0] ss:$8 sps:$4 sm:$0xff]  }
  0x2a   :  { %1038 = vmatpush3.msra.mxu0 %v89_v56  ;;  %v1105_v56 = vld [vmem:[#allocation2 + $0x144] ss:$8 sps:$4 sm:$0xff]  }
  0x2b   :  { %1039 = vmatprep.subr.mxu0 %v104_v58  ;;  %v1103_v58 = vld [vmem:[#allocation2 + $0x140] ss:$8 sps:$4 sm:$0xff]  }
  0x2c   :  { %1040 = vmatpush3.msra.mxu0 %v88_v61  ;;  %v1106_v61 = vld [vmem:[#allocation2 + $0xb0] ss:$8 sps:$4 sm:$0xff]  }
  0x2d   :  { %1041 = vmatprep.subr.mxu0 %v103_v2  ;;  %v1115_v2 = vld [vmem:[#allocation2 + $0x120] ss:$8 sps:$4 sm:$0xff]  }
  0x2e   :  { %1042 = vmatpush3.msra.mxu0 %v87_v4  ;;  %v1123_v4 = vld [vmem:[#allocation2 + $0x114] ss:$8 sps:$4 sm:$0xff]  }
  0x2f   :  { %184 = vmatmul.mubr.f32.vlgmr.msra.gmra.mxu0 %v81_v5  ;;  %864 = vmatprep.subr.bf16.mxu0 %v1087_v44  ;;  %v1118_v5 = vld [vmem:[#allocation2 + $0x90] ss:$8 sps:$4 sm:$0xff]  }
  0x30   :  { %865 = vmatpush1.bf16.msra.mxu0 %v1085_v46 }
  0x31   :  { %866 = vmatprep.subr.bf16.mxu0 %v1093_v48 }
  0x34   :  { %867 = vmatpush1.bf16.msra.mxu0 %v1091_v50 }
  0x35   :  { %868 = vmatprep.subr.bf16.mxu0 %v1099_v52 }
  0x38   :  { %869 = vmatpush1.bf16.msra.mxu0 %v1097_v54 }
  0x39   :  { %870 = vmatprep.subr.bf16.mxu0 %v1105_v56 }
  0x3c   :  { %871 = vmatpush1.bf16.msra.mxu0 %v1103_v58 }
  0x3d   :  { %872 = vmatprep.subr.bf16.mxu0 %v1111_v60 }
  0x40   :  { %873 = vmatpush1.bf16.msra.mxu0 %v1109_v62 }
  0x41   :  { %874 = vmatprep.subr.bf16.mxu0 %v1117_v0 }
  0x44   :  { %875 = vmatpush1.bf16.msra.mxu0 %v1115_v2 }
  0x45   :  { %876 = vmatprep.subr.bf16.mxu0 %v1123_v4 }
  0xef   :  { %v1043_v6 = vpop.f32.mrf.mxu0 }
  0xf1   :  { %v1044_v7 = vpop.f32.mrf.mxu0 }
  0xf2   :  { %v1045_v8 = vadd.f32 %v1044_v7, %v1043_v6  ;;  %v1121_v6 = vld [vmem:[#allocation2 + $0x110] ss:$8 sps:$4 sm:$0xff]   ;;  %v1126_v7 = vld [vmem:[#allocation2 + $0x84] ss:$8 sps:$4 sm:$0xff]  }
  0xf3   :  { %877 = vmatpush1.bf16.msra.mxu0 %v1121_v6 }
  0xf4   :  { %v190_v9 = vmul.f32 0.001953125, %v1045_v8  ;;  %v1129_v8 = vld [vmem:[#allocation2 + $0x104] ss:$8 sps:$4 sm:$0xff]  }
  0xf5   :  { %878 = vmatprep.subr.bf16.mxu0 %v1129_v8 }
  0xf6   :  { %v191_v10 = vmul.f32 %v190_v9, %v190_v9 }
  0xf8   :  { %193 = vrot.lane.b32.xlu0 %v191_v10, %s1195_s29  ;;  %v1127_v10 = vld [vmem:[#allocation2 + $0x100] ss:$8 sps:$4 sm:$0xff]  }
  0xf9   :  { %879 = vmatpush1.bf16.msra.mxu0 %v1127_v10 }
 0x16a   :  { %v194_v11 = vpop.permute.xlu0 %193 }
 0x16b   :  { %v196_v12 = vsub.f32 %v190_v9, %v194_v11  ;;  %v1198_v11 = vmov 0  }
 0x16c   :  { %896 = vmatprep.mubr.bf16.mxu0 %v1198_v11 }
 0x16d   :  { %v197_v13 = vmax.f32 %v196_v12, 0.0  ;;  %v1199_v12 = vmov 1966171168  }
 0x16f   :  { %v198_v14 = vadd.f32 1e-05, %v197_v13  ;;  %v290_v13 = vunpack.c.l.s4 %v1199_v12 }
 0x171   :  { %1130 = vrsqrt.f32 %v198_v14  ;;  %v292_v14 = vlaneseq  ;;  %v291_v16 = vunpack.c.0.s8 %v290_v13 }
 0x17e   :  { %v1131_v20 = vpop.eup %1130 }
 0x17f   :  { %201 = vrot.lane.b32.xlu0 %v1131_v20, %s1196_s8  ;;  %v1382_v20 = vshrl.u32 %v292_v14, 7 }
 0x181   :  { %v294_v21 = vsub.s32 %v291_v16, %v1382_v20  ;;  %v411_v2 = vand.u32 15, %v1382_v20  ;;  %vm463_vm3 = vcmp.lt.s32.totalorder %v1382_v20, 1  ;;  %v405_v13 = vadd.s32 16, %v1382_v20 }
 0x182   :  { %vm488_vm5 = vcmp.lt.s32.totalorder %v1382_v20, 7 }
 0x183   :  { %vm1405_vm4 = vcmp.ne.s32.totalorder %v411_v2, 0 }
 0x184   :  { %vm992_vm8 = vmpackc.low %vm1200_vm7, %vm1405_vm4 }
 0x1f1   :  { %v202_v24 = vpop.permute.xlu0 %201 }
 0x1f2   :  { %v204_v25 = vmul.f32 %v202_v24, %v190_v9  ;;  %v1124_v9 = vld [vmem:[#allocation2 + $0x80] ss:$8 sps:$4 sm:$0xff]  }
 0x1f4   :  { %206 = vrot.lane.b32.xlu1 %v204_v25, %s1195_s29 }
 0x266   :  { %v207_v27 = vpop.permute.xlu1 %206 }
 0x267   :  { %v210_v29 = vsel %vm209_vm1, %v202_v24, %v207_v27  ;;  %v338_v24 = vld [vmem:[%s1444_s1] sm:$0x1] }
 0x268   :  { %942 = vmatmul.mubr.msk.f32.vlgmr.msra.gmra.mxu1 %vm213_vm2, %v210_v29  ;;  %v1389_v29 = vsub.s32 0, %v1382_v20 }
 0x269   :  { %812 = vmatpush1.bf16.msra.mxu1 %v1058_v26 }
 0x26a   :  { %813 = vmatprep.subr.bf16.mxu1 %v1063_v28 }
 0x26d   :  { %814 = vmatpush1.bf16.msra.mxu1 %v1061_v30 }
 0x26e   :  { %815 = vmatprep.subr.bf16.mxu1 %v1066_v31 }
 0x271   :  { %816 = vmatpush1.bf16.msra.mxu1 %v1064_v32 }
 0x272   :  { %817 = vmatprep.subr.bf16.mxu1 %v1069_v33 }
 0x275   :  { %818 = vmatpush1.bf16.msra.mxu1 %v1067_v34 }
 0x276   :  { %819 = vmatprep.subr.bf16.mxu1 %v1072_v35 }
 0x279   :  { %820 = vmatpush1.bf16.msra.mxu1 %v1070_v36  ;;  %v341_v36 = vld [vmem:[%s1445_s2] sm:$0x1] }
 0x27a   :  { %821 = vmatprep.subr.bf16.mxu1 %v1075_v37 }
 0x27d   :  { %822 = vmatpush1.bf16.msra.mxu1 %v1073_v38 }
 0x27e   :  { %823 = vmatprep.subr.bf16.mxu1 %v1078_v39 }
 0x281   :  { %824 = vmatpush1.bf16.msra.mxu1 %v1076_v40 }
 0x282   :  { %825 = vmatprep.subr.bf16.mxu1 %v1081_v41 }
 0x285   :  { %826 = vmatpush1.bf16.msra.mxu1 %v1079_v42 }
 0x286   :  { %827 = vmatprep.subr.bf16.mxu1 %v1084_v43 }
 0x289   :  { %828 = vmatpush2.bf16.msra.mxu1 %v1082_v45 }
 0x28a   :  { %829 = vmatprep.subr.bf16.mxu1 %v1090_v47 }
 0x28d   :  { %830 = vmatpush2.bf16.msra.mxu1 %v1088_v49 }
 0x28e   :  { %831 = vmatprep.subr.bf16.mxu1 %v1096_v51 }
 0x291   :  { %832 = vmatpush2.bf16.msra.mxu1 %v1094_v53 }
 0x292   :  { %833 = vmatprep.subr.bf16.mxu1 %v1102_v55 }
 0x295   :  { %834 = vmatpush2.bf16.msra.mxu1 %v1100_v57 }
 0x296   :  { %835 = vmatprep.subr.bf16.mxu1 %v1108_v59 }
 0x299   :  { %836 = vmatpush2.bf16.msra.mxu1 %v1106_v61 }
 0x29a   :  { %837 = vmatprep.subr.bf16.mxu1 %v1114_v63 }
 0x29d   :  { %838 = vmatpush2.bf16.msra.mxu1 %v1112_v1  ;;  %v404_v1 = vadd.s32 8, %v1382_v20 }
 0x29e   :  { %839 = vmatprep.subr.bf16.mxu1 %v1120_v3 }
 0x29f   :  { %v418_v6 = vand.u32 15, %v404_v1 }
 0x2a1   :  { %840 = vmatpush2.bf16.msra.mxu1 %v1118_v5  ;;  %vm1009_vm6 = vcmp.ne.s32.totalorder %v418_v6, 15 }
 0x2a2   :  { %841 = vmatprep.subr.bf16.mxu1 %v1126_v7  ;;  %vm1000_vm9 = vmpackc.low %vm1009_vm6, %vm1200_vm7 }
 0x2a5   :  { %842 = vmatpush2.bf16.msra.mxu1 %v1124_v9 }
 0x328   :  { %v283_v22 = vpop.f32.mrf.mxu1 }
 0x329   :  { %v295_v23 = vrot.slane %v283_v22, %v294_v21 }
 0x32a   :  { %v285_v25 = vpop.f32.mrf.mxu1 }
 0x32b   :  { %v296_v26 = vcombine.high %v295_v23, %v295_v23  ;;  %v303_v27 = vrot.slane %v295_v23, %v294_v21  ;;  %v320_v28 = vrot.slane %v285_v25, %v294_v21 }
 0x32d   :  { %v310_v30 = vrot.slane %v296_v26, %v294_v21  ;;  %v339_v31 = vmul.f32 %v338_v24, %v303_v27  ;;  %v321_v32 = vcombine.high %v320_v28, %v320_v28  ;;  %v328_v33 = vrot.slane %v320_v28, %v294_v21 }
 0x32f   :  { %v340_v34 = vmul.f32 %v338_v24, %v310_v30  ;;  %v335_v35 = vrot.slane %v321_v32, %v294_v21  ;;  %v342_v37 = vmul.f32 %v338_v24, %v328_v33  ;;  %v351_v38 = vrot.slane %v339_v31, %v1389_v29 }
 0x330   :  { %v425_v33 = vand.u32 15, %v405_v13 }
 0x331   :  { %v355_v39 = vrot.slane %v340_v34, %v1389_v29  ;;  %v343_v40 = vmul.f32 %v338_v24, %v335_v35  ;;  %v344_v41 = vsub.f32 %v341_v36, %v342_v37  ;;  %v358_v43 = vmul.f32 %v351_v38, %v1295_v15 }
 0x332   :  { %v359_v44 = vmul.f32 %v351_v38, %v1303_v17  ;;  %v406_v24 = vadd.s32 24, %v1382_v20  ;;  %vm1008_vm10 = vcmp.ne.s32.totalorder %v425_v33, 0 }
 0x333   :  { %v345_v42 = vsub.f32 %v341_v36, %v343_v40  ;;  %v367_v45 = vrot.slane %v344_v41, %v1389_v29  ;;  %v360_v46 = vmul.f32 %v355_v39, %v1308_v18  ;;  %v361_v47 = vmul.f32 %v355_v39, %v1313_v19  ;;  %vm996_vm12 = vmpackc.low %vm1200_vm7, %vm1008_vm10 }
 0x334   :  { %v432_v36 = vand.u32 15, %v406_v24 }
 0x335   :  { %v371_v48 = vrot.slane %v345_v42, %v1389_v29  ;;  %v374_v49 = vadd.f32 %v367_v45, %v358_v43  ;;  %v375_v50 = vadd.f32 %v367_v45, %v359_v44  ;;  %v559_v45 = vld [vmem:[%s1449_s6] sm:$0x3]  ;;  %s1201_s6 = smov [#allocation5]  }
 0x336   :  { %vm1010_vm11 = vcmp.ne.s32.totalorder %v432_v36, 15  ;;  %s930_s14 = sshll.u32 %s1201_s6, 4  ;;  %s931_s14 = int_to_ptr.vmem [resolvable:$true] %s930_s14 }
 0x337   :  { %v376_v51 = vadd.f32 %v371_v48, %v360_v46  ;;  %v377_v52 = vadd.f32 %v371_v48, %v361_v47  ;;  %v378_v53 = vsub.f32 0.0, %v374_v49  ;;  %v379_v54 = vsub.f32 0.0, %v375_v50  ;;  %vm1004_vm13 = vmpackc.low %vm1010_vm11, %vm1200_vm7  ;;  %s1168_s15 = scalar_lea.vmem %s931_s14, 1024  ;;  %p1173_p6 = scmp.lt.s32.totalorder %s931_s14, %s931_s14 }
 0x338   :  { %v567_v46 = vsub.s32 1, %v1382_v20  ;;  %v564_v47 = vrot.slane %v559_v45, %v1389_v29  ;;  %p1169_p5 = scmp.ne.s32.totalorder %s931_s14, %s1168_s15  ;;  %p1174_p7 = scmp.lt.s32.totalorder %s1168_s15, %s1168_s15 }
 0x339   :  { %v380_v55 = vsub.f32 0.0, %v376_v51  ;;  %v381_v56 = vsub.f32 0.0, %v377_v52  ;;  %v382_v57 = vmul.f32 1.442695, %v378_v53  ;;  %v384_v17 = vmul.f32 1.442695, %v379_v54 }
 0x33a   :  { %v568_v48 = vrot.slane %v559_v45, %v567_v46  ;;  %p1175_p8 = por %p1174_p7, %p1173_p6 }
 0x33b   :  { %v386_v15 = vmul.f32 1.442695, %v380_v55  ;;  %v388_v58 = vmul.f32 1.442695, %v381_v56  ;;  %1132 = vpow2.f32 %v382_v57 }
 0x33c   :  { %p1176_p9 = pnand %p1175_p8, %p1169_p5 }
 0x33d   :  { %1134 = vpow2.f32 %v386_v15 }
 0x33e   :  { %1136 = vpow2.f32 %v388_v58 }
 0x33f   :  { %1138 = vpow2.f32 %v384_v17 }
 0x348   :  { %v1133_v18 = vpop.eup %1132 }
 0x349   :  { %v390_v59 = vadd.f32 1.0, %v1133_v18 }
 0x34a   :  { %v1135_v19 = vpop.eup %1134 }
 0x34b   :  { %v1137_v60 = vpop.eup %1136  ;;  %v392_v61 = vadd.f32 1.0, %v1135_v19  ;;  %1140 = vrcp.f32 %v390_v59 }
 0x34c   :  { %v1139_v62 = vpop.eup %1138  ;;  %v393_v63 = vadd.f32 1.0, %v1137_v60 }
 0x34d   :  { %1142 = vrcp.f32 %v392_v61  ;;  %v391_v0 = vadd.f32 1.0, %v1139_v62 }
 0x34e   :  { %1144 = vrcp.f32 %v393_v63 }
 0x34f   :  { %1146 = vrcp.f32 %v391_v0 }
 0x358   :  { %v1141_v3 = vpop.eup %1140 }
 0x359   :  { %v398_v5 = vmul.f32 %v1141_v3, %v374_v49 }
 0x35a   :  { %v1143_v4 = vpop.eup %1142 }
 0x35b   :  { %v1145_v7 = vpop.eup %1144  ;;  %v400_v8 = vmul.f32 %v1143_v4, %v376_v51  ;;  %v459_v16 = vrot.slane %v398_v5, 7  ;;  %v484_v21 = vrot.slane %v398_v5, 1 }
 0x35c   :  { %v1147_v9 = vpop.eup %1146  ;;  %v401_v10 = vmul.f32 %v1145_v7, %v377_v52 }
 0x35d   :  { %v399_v14 = vmul.f32 %v1147_v9, %v375_v50  ;;  %v486_v22 = vrot.slane %v400_v8, 1  ;;  %v461_v38 = vrot.slane %v400_v8, 7 }
 0x35e   :  { %v462_v23 = vrot.slane %v401_v10, 7  ;;  %v508_v37 = vpack.c.bf16 %v401_v10, %v400_v8  ;;  %v487_v39 = vrot.slane %v401_v10, 1 }
 0x35f   :  { %v460_v25 = vrot.slane %v399_v14, 7  ;;  %v485_v26 = vrot.slane %v399_v14, 1  ;;  %v507_v27 = vpack.c.bf16 %v399_v14, %v398_v5 }
 0x360   :  { %v467_v28 = vsel %vm463_vm3, %v462_v23, %v459_v16  ;;  %v464_v40 = vsel %vm463_vm3, %v461_v38, %v462_v23  ;;  %v489_v42 = vsel %vm488_vm5, %v486_v22, %v487_v39  ;;  %v492_v43 = vsel %vm488_vm5, %v487_v39, %v484_v21 }
 0x361   :  { %843 = vmatprep.mubr.bf16.mxu1 %v507_v27  ;;  %v466_v30 = vsel %vm463_vm3, %v459_v16, %v460_v25  ;;  %v490_v31 = vsel %vm488_vm5, %v485_v26, %v486_v22  ;;  %v491_v32 = vsel %vm488_vm5, %v484_v21, %v485_v26  ;;  %v465_v41 = vsel %vm463_vm3, %v460_v25, %v461_v38 }
 0x362   :  { %v993_v34 = vpack.c.bf16 %v466_v30, %v467_v28  ;;  %v1001_v35 = vpack.c.bf16 %v490_v31, %v491_v32  ;;  %v997_v44 = vpack.c.bf16 %v464_v40, %v465_v41 }
 0x364   :  { %994 = vmatmul.mubr.msk.bf16.vlgmr.msra.gmra.mxu1 %vm992_vm8, %v993_v34  ;;  %1002 = vmatmul.mubr.msk.bf16.vlgmr.msra.gmra.mxu0 %vm1000_vm9, %v1001_v35 }
 0x365   :  { %853 = vmatprep.mubr.bf16.mxu1 %v508_v37  ;;  %906 = vmatprep.mubr.bf16.mxu0 %v1198_v11  ;;  %v1005_v11 = vpack.c.bf16 %v492_v43, %v489_v42 }
 0x36c   :  { %998 = vmatmul.mubr.msk.bf16.gmra.mxu1 %vm996_vm12, %v997_v44  ;;  %1006 = vmatmul.mubr.msk.bf16.gmra.mxu0 %vm1004_vm13, %v1005_v11 }
 0x424   :  { %v845_v49 = vpop.f32.mrf.mxu1  ;;  %v898_v50 = vpop.f32.mrf.mxu0 }
 0x425   :  { %v846_v51 = vadd.f32 %v845_v49, %v564_v47 }
 0x426   :  { %v847_v52 = vpop.f32.mrf.mxu1  ;;  %v900_v53 = vpop.f32.mrf.mxu0 }
 0x427   :  { %v899_v54 = vadd.f32 %v898_v50, %v846_v51  ;;  %v848_v55 = vadd.f32 %v847_v52, %v568_v48 }
 0x428   :  { %v849_v56 = vpop.f32.mrf.mxu1  ;;  %v902_v57 = vpop.f32.mrf.mxu0 }
 0x429   :  { %917 = vst [vmem:[#allocation5] sm:$0xff] %v899_v54  ;;  %v901_v15 = vadd.f32 %v900_v53, %v848_v55  ;;  %v850_v58 = vadd.f32 %v849_v56, %v564_v47 }
 0x42a   :  { %v851_v17 = vpop.f32.mrf.mxu1  ;;  %v904_v18 = vpop.f32.mrf.mxu0 }
 0x42b   :  { %918 = vst [vmem:[#allocation5 + $0x8] sm:$0xff] %v901_v15  ;;  %v903_v19 = vadd.f32 %v902_v57, %v850_v58  ;;  %v852_v20 = vadd.f32 %v851_v17, %v568_v48 }
 0x42c   :  { %v855_v59 = vpop.f32.mrf.mxu1  ;;  %v908_v29 = vpop.f32.mrf.mxu0 }
 0x42d   :  { %919 = vst [vmem:[#allocation5 + $0x10] sm:$0xff] %v903_v19  ;;  %v905_v60 = vadd.f32 %v904_v18, %v852_v20  ;;  %v856_v61 = vadd.f32 %v855_v59, %v564_v47 }
 0x42e   :  { %v857_v62 = vpop.f32.mrf.mxu1  ;;  %v910_v63 = vpop.f32.mrf.mxu0 }
 0x42f   :  { %920 = vst [vmem:[#allocation5 + $0x18] sm:$0xff] %v905_v60  ;;  %v909_v0 = vadd.f32 %v908_v29, %v856_v61  ;;  %v858_v1 = vadd.f32 %v857_v62, %v568_v48 }
 0x430   :  { %v859_v2 = vpop.f32.mrf.mxu1  ;;  %v912_v3 = vpop.f32.mrf.mxu0 }
 0x431   :  { %921 = vst [vmem:[#allocation5 + $0x20] sm:$0xff] %v909_v0  ;;  %v911_v4 = vadd.f32 %v910_v63, %v858_v1  ;;  %v860_v5 = vadd.f32 %v859_v2, %v564_v47 }
 0x432   :  { %v861_v6 = vpop.f32.mrf.mxu1  ;;  %v914_v9 = vpop.f32.mrf.mxu0 }
 0x433   :  { %922 = vst [vmem:[#allocation5 + $0x28] sm:$0xff] %v911_v4  ;;  %v913_v7 = vadd.f32 %v912_v3, %v860_v5  ;;  %v862_v8 = vadd.f32 %v861_v6, %v568_v48 }
 0x435   :  { %923 = vst [vmem:[#allocation5 + $0x30] sm:$0xff] %v913_v7  ;;  %v915_v10 = vadd.f32 %v914_v9, %v862_v8 }
 0x437   :  { %924 = vst [vmem:[#allocation5 + $0x38] sm:$0xff] %v915_v10 }
 0x438   :  { %1179 = shalt.err (!%p1176_p9)
}
 0x439   :  { %s1202_s5 = smov 256   ;;  %s1203_s16 = smov 16  }
 0x43a   :  { %936 = dma.vmem_to_hbm [thread:$0]  %s931_s14, 1024, %s1450_s7, [#allocation4], %s1202_s5, %s1202_s5, %s1203_s16  }
 0x43b   :  { %1190 = dma.done.wait [#allocation4], 1024  }
 0x43c   :  { %1191 = vsyncadd [#allocation4], 4294966272 }
 0x43d   :  { %940 = vsyncpa [#allocation3], 1 }
 0x43e   :  { %941 = vsyncpa [#allocation4], 1 }

// kernel: tpu_custom_call.1
= control target key start
LH: loop header
LB: loop body
LE: loop exit
PB: predicated region body
PF: predicated region fallthrough
CT: control target
= control target key end

     0   :  { %12 = vsyncpa [#allocation3], 0  ;;  %s1443_s0 = inlined_call_operand.vmem [shape: f32[2,16,128], index: 0, kind: input, shape index: {}]   ;;  %s1444_s1 = inlined_call_operand.vmem [shape: f32[1,128], index: 1, kind: input, shape index: {}]   ;;  %s1445_s2 = inlined_call_operand.vmem [shape: f32[1,128], index: 2, kind: input, shape index: {}]   ;;  %s1446_s3 = inlined_call_operand.vmem [shape: f32[256,8], index: 3, kind: input, shape index: {}]   ;;  %s1447_s4 = inlined_call_operand.vmem [shape: f32[8,256], index: 4, kind: input, shape index: {}]   ;;  %s1448_s5 = inlined_call_operand.hbm [shape: bf16[384,256], index: 5, kind: input, shape index: {}]   ;;  %s1449_s6 = inlined_call_operand.vmem [shape: f32[1,256], index: 6, kind: input, shape index: {}]   ;;  %s1450_s7 = inlined_call_operand.hbm [shape: f32[2,16,256], index: 7, kind: output, shape index: {}]  }
   0x1   :  { %13 = vsyncpa [#allocation4], 0  ;;  %s1192_s24 = smov [#allocation2]  }
   0x2   :  { %s29_s25 = sshll.u32 %s1192_s24, 4  ;;  %s30_s25 = int_to_ptr.vmem [resolvable:$true] %s29_s25 }
   0x3   :  { %s1156_s26 = scalar_lea.vmem %s30_s25, 6144  ;;  %p1161_p1 = scmp.lt.s32.totalorder %s30_s25, %s30_s25 }
   0x4   :  { %p1157_p0 = scmp.ne.s32.totalorder %s30_s25, %s1156_s26  ;;  %p1162_p2 = scmp.lt.s32.totalorder %s1156_s26, %s1156_s26 }
   0x6   :  { %p1163_p3 = por %p1162_p2, %p1161_p1 }
   0x8   :  { %p1164_p4 = pnand %p1163_p3, %p1157_p0 }
   0xa   :  { %1167 = shalt.err (!%p1164_p4)
}
   0xb   :  { %s1193_s27 = smov 128   ;;  %s1194_s28 = smov 8  }
   0xc   :  { %35 = dma.hbm_to_vmem [thread:$0]  %s1448_s5, 6144, %s30_s25, [#allocation3], %s1193_s27, %s1193_s27, %s1194_s28  }
   0xd   :  { %1188 = dma.done.wait [#allocation3], 6144  }
   0xe   :  { %1189 = vsyncadd [#allocation3], 4294961152  ;;  %v118_v0 = vld [vmem:[%s1446_s3 + $0xf8] sm:$0xff]  ;;  %v117_v2 = vld [vmem:[%s1446_s3 + $0xf0] sm:$0xff]  ;;  %vm80_vm0 = vcmask 1041409   ;;  %s1195_s29 = smov 4  }
   0xf   :  { %v102_v1 = vld [vmem:[%s1446_s3 + $0x78] sm:$0xff]  ;;  %1011 = vmatprep.subr.mxu0 %v118_v0  ;;  %v101_v3 = vld [vmem:[%s1446_s3 + $0x70] sm:$0xff]  ;;  %v116_v4 = vld [vmem:[%s1446_s3 + $0xe8] sm:$0xff]  ;;  %s1196_s8 = smov 124   ;;  %vm209_vm1 = vcmask 31744   ;;  %vm213_vm2 = vcmask 64512  }
  0x10   :  { %1012 = vmatpush3.msra.mxu0 %v102_v1  ;;  %v100_v5 = vld [vmem:[%s1446_s3 + $0x68] sm:$0xff]  ;;  %v115_v6 = vld [vmem:[%s1446_s3 + $0xe0] sm:$0xff]  ;;  %v114_v8 = vld [vmem:[%s1446_s3 + $0xd8] sm:$0xff]  ;;  %vm1200_vm7 = vmmov 1  }
  0x11   :  { %1013 = vmatprep.subr.mxu0 %v117_v2  ;;  %v99_v7 = vld [vmem:[%s1446_s3 + $0x60] sm:$0xff]  ;;  %v98_v9 = vld [vmem:[%s1446_s3 + $0x58] sm:$0xff]  ;;  %v113_v10 = vld [vmem:[%s1446_s3 + $0xd0] sm:$0xff] }
  0x12   :  { %1014 = vmatpush3.msra.mxu0 %v101_v3  ;;  %v97_v11 = vld [vmem:[%s1446_s3 + $0x50] sm:$0xff]  ;;  %v112_v12 = vld [vmem:[%s1446_s3 + $0xc8] sm:$0xff]  ;;  %v111_v14 = vld [vmem:[%s1446_s3 + $0xc0] sm:$0xff] }
  0x13   :  { %1015 = vmatprep.subr.mxu0 %v116_v4  ;;  %v96_v13 = vld [vmem:[%s1446_s3 + $0x48] sm:$0xff]  ;;  %v1295_v15 = vld [vmem:[%s1443_s0] sm:$0xff]  ;;  %v1308_v18 = vld [vmem:[%s1443_s0 + $0x10] sm:$0xff] }
  0x14   :  { %1016 = vmatpush3.msra.mxu0 %v100_v5  ;;  %v95_v16 = vld [vmem:[%s1446_s3 + $0x40] sm:$0xff]  ;;  %v1303_v17 = vld [vmem:[%s1443_s0 + $0x8] sm:$0xff]  ;;  %v1313_v19 = vld [vmem:[%s1443_s0 + $0x18] sm:$0xff]  ;;  %v60_v20 = vmul.f32 %v1295_v15, %v1295_v15  ;;  %v62_v23 = vmul.f32 %v1308_v18, %v1308_v18 }
  0x15   :  { %1017 = vmatprep.subr.mxu0 %v115_v6  ;;  %v110_v21 = vld [vmem:[%s1446_s3 + $0xb8] sm:$0xff]  ;;  %v61_v22 = vmul.f32 %v1303_v17, %v1303_v17  ;;  %v63_v24 = vmul.f32 %v1313_v19, %v1313_v19  ;;  %v46_v25 = vadd.f32 %v1303_v17, %v1295_v15  ;;  %v53_v27 = vadd.f32 %v1313_v19, %v1308_v18  ;;  %v109_v28 = vld [vmem:[%s1446_s3 + $0xb0] sm:$0xff]  ;;  %v108_v34 = vld [vmem:[%s1446_s3 + $0xa8] sm:$0xff] }
  0x16   :  { %1018 = vmatpush3.msra.mxu0 %v99_v7  ;;  %v94_v26 = vld [vmem:[%s1446_s3 + $0x38] sm:$0xff]  ;;  %v93_v32 = vld [vmem:[%s1446_s3 + $0x30] sm:$0xff]  ;;  %v92_v38 = vld [vmem:[%s1446_s3 + $0x28] sm:$0xff] }
  0x17   :  { %1019 = vmatprep.subr.mxu0 %v114_v8  ;;  %v64_v29 = vadd.f32 %v61_v22, %v60_v20  ;;  %v71_v30 = vadd.f32 %v63_v24, %v62_v23  ;;  %v47_v31 = vrot.slane %v46_v25, 4  ;;  %v54_v33 = vrot.slane %v53_v27, 4  ;;  %v107_v40 = vld [vmem:[%s1446_s3 + $0xa0] sm:$0xff]  ;;  %v106_v46 = vld [vmem:[%s1446_s3 + $0x98] sm:$0xff]  ;;  %v105_v52 = vld [vmem:[%s1446_s3 + $0x90] sm:$0xff] }
  0x18   :  { %1020 = vmatpush3.msra.mxu0 %v98_v9  ;;  %v91_v44 = vld [vmem:[%s1446_s3 + $0x20] sm:$0xff]  ;;  %v90_v50 = vld [vmem:[%s1446_s3 + $0x18] sm:$0xff]  ;;  %v89_v56 = vld [vmem:[%s1446_s3 + $0x10] sm:$0xff]  ;;  %v1197_v22 = vmov 0.0  }
  0x19   :  { %1021 = vmatprep.subr.mxu0 %v113_v10  ;;  %v65_v35 = vrot.slane %v64_v29, 4  ;;  %v72_v36 = vrot.slane %v71_v30, 4  ;;  %v48_v37 = vadd.f32 %v47_v31, %v46_v25  ;;  %v55_v39 = vadd.f32 %v54_v33, %v53_v27  ;;  %v104_v58 = vld [vmem:[%s1446_s3 + $0x88] sm:$0xff]  ;;  %v103_v2 = vld [vmem:[%s1446_s3 + $0x80] sm:$0xff]  ;;  %281 = vmatprep.mubr.f32.mxu1 %v1197_v22  ;;  %v1060_v23 = vld [vmem:[#allocation2 + $0x74] ss:$8 sps:$4 sm:$0xff]  }
  0x1a   :  { %1022 = vmatpush3.msra.mxu0 %v97_v11  ;;  %v88_v61 = vld [vmem:[%s1446_s3 + $0x8] sm:$0xff]  ;;  %v87_v4 = vld [vmem:[%s1446_s3] sm:$0xff]  ;;  %v1066_v31 = vld [vmem:[#allocation2 + $0x54] ss:$8 sps:$4 sm:$0xff]  }
  0x1b   :  { %1023 = vmatprep.subr.mxu0 %v112_v12  ;;  %v66_v41 = vadd.f32 %v65_v35, %v64_v29  ;;  %v73_v42 = vadd.f32 %v72_v36, %v71_v30  ;;  %v49_v43 = vrot.slane %v48_v37, 2  ;;  %v56_v45 = vrot.slane %v55_v39, 2  ;;  %v1061_v30 = vld [vmem:[#allocation2 + $0x60] ss:$8 sps:$4 sm:$0xff]   ;;  %v1069_v33 = vld [vmem:[#allocation2 + $0x44] ss:$8 sps:$4 sm:$0xff]  }
  0x1c   :  { %1024 = vmatpush3.msra.mxu0 %v96_v13  ;;  %v1072_v35 = vld [vmem:[#allocation2 + $0x34] ss:$8 sps:$4 sm:$0xff]   ;;  %v1070_v36 = vld [vmem:[#allocation2 + $0x30] ss:$8 sps:$4 sm:$0xff]  }
  0x1d   :  { %1025 = vmatprep.subr.mxu0 %v111_v14  ;;  %v67_v47 = vrot.slane %v66_v41, 2  ;;  %v74_v48 = vrot.slane %v73_v42, 2  ;;  %v50_v49 = vadd.f32 %v49_v43, %v48_v37  ;;  %v57_v51 = vadd.f32 %v56_v45, %v55_v39  ;;  %v1075_v37 = vld [vmem:[#allocation2 + $0x24] ss:$8 sps:$4 sm:$0xff]   ;;  %v1078_v39 = vld [vmem:[#allocation2 + $0x14] ss:$8 sps:$4 sm:$0xff]  }
  0x1e   :  { %1026 = vmatpush3.msra.mxu0 %v95_v16  ;;  %v212_v16 = vld [vmem:[%s1447_s4 + $0x8] sm:$0xff]  ;;  %v1084_v43 = vld [vmem:[#allocation2 + $0xf4] ss:$8 sps:$4 sm:$0xff]   ;;  %v1082_v45 = vld [vmem:[#allocation2 + $0xf0] ss:$8 sps:$4 sm:$0xff]  }
  0x1f   :  { %1027 = vmatprep.subr.mxu0 %v110_v21  ;;  %v68_v53 = vadd.f32 %v67_v47, %v66_v41  ;;  %v75_v54 = vadd.f32 %v74_v48, %v73_v42  ;;  %v51_v55 = vrot.slane %v50_v49, 1  ;;  %v58_v57 = vrot.slane %v57_v51, 1  ;;  %247 = vmatprep.subr.mxu1 %v212_v16  ;;  %v211_v21 = vld [vmem:[%s1447_s4] sm:$0xff] }
  0x20   :  { %1028 = vmatpush3.msra.mxu0 %v94_v26  ;;  %248 = vmatpush1.msra.mxu1 %v211_v21  ;;  %v1058_v26 = vld [vmem:[#allocation2 + $0x70] ss:$8 sps:$4 sm:$0xff]   ;;  %v1081_v41 = vld [vmem:[#allocation2 + $0x4] ss:$8 sps:$4 sm:$0xff]   ;;  %v1079_v42 = vld [vmem:[#allocation2] ss:$8 sps:$4 sm:$0xff]  }
  0x21   :  { %1029 = vmatprep.subr.mxu0 %v109_v28  ;;  %v69_v59 = vrot.slane %v68_v53, 1  ;;  %v76_v60 = vrot.slane %v75_v54, 1  ;;  %v52_v0 = vadd.f32 %v51_v55, %v50_v49  ;;  %v59_v1 = vadd.f32 %v58_v57, %v57_v51  ;;  %811 = vmatprep.subr.bf16.mxu1 %v1060_v23  ;;  %v1063_v28 = vld [vmem:[#allocation2 + $0x64] ss:$8 sps:$4 sm:$0xff]   ;;  %v1088_v49 = vld [vmem:[#allocation2 + $0xe0] ss:$8 sps:$4 sm:$0xff]  }
  0x22   :  { %1030 = vmatpush3.msra.mxu0 %v93_v32  ;;  %v1064_v32 = vld [vmem:[#allocation2 + $0x50] ss:$8 sps:$4 sm:$0xff]   ;;  %v1090_v47 = vld [vmem:[#allocation2 + $0xe4] ss:$8 sps:$4 sm:$0xff]   ;;  %v1096_v51 = vld [vmem:[#allocation2 + $0xd4] ss:$8 sps:$4 sm:$0xff]  }
  0x23   :  { %1031 = vmatprep.subr.mxu0 %v108_v34  ;;  %v70_v62 = vadd.f32 %v69_v59, %v68_v53  ;;  %v77_v63 = vadd.f32 %v76_v60, %v75_v54  ;;  %v81_v5 = vsel %vm80_vm0, %v59_v1, %v52_v0  ;;  %v1067_v34 = vld [vmem:[#allocation2 + $0x40] ss:$8 sps:$4 sm:$0xff]   ;;  %v1093_v48 = vld [vmem:[#allocation2 + $0x164] ss:$8 sps:$4 sm:$0xff]   ;;  %v1094_v53 = vld [vmem:[#allocation2 + $0xd0] ss:$8 sps:$4 sm:$0xff]  }
  0x24   :  { %1032 = vmatpush3.msra.mxu0 %v92_v38  ;;  %v1073_v38 = vld [vmem:[#allocation2 + $0x20] ss:$8 sps:$4 sm:$0xff]   ;;  %v1097_v54 = vld [vmem:[#allocation2 + $0x150] ss:$8 sps:$4 sm:$0xff]   ;;  %v1102_v55 = vld [vmem:[#allocation2 + $0xc4] ss:$8 sps:$4 sm:$0xff]  }
  0x25   :  { %1033 = vmatprep.subr.mxu0 %v107_v40  ;;  %v85_v3 = vsel %vm80_vm0, %v77_v63, %v70_v62  ;;  %v1076_v40 = vld [vmem:[#allocation2 + $0x10] ss:$8 sps:$4 sm:$0xff]   ;;  %v1100_v57 = vld [vmem:[#allocation2 + $0xc0] ss:$8 sps:$4 sm:$0xff]   ;;  %v1108_v59 = vld [vmem:[#allocation2 + $0xb4] ss:$8 sps:$4 sm:$0xff]  }
  0x26   :  { %1034 = vmatpush3.msra.mxu0 %v91_v44  ;;  %183 = vmatprep.mubr.f32.mxu0 %v85_v3  ;;  %v1087_v44 = vld [vmem:[#allocation2 + $0x174] ss:$8 sps:$4 sm:$0xff]   ;;  %v1109_v62 = vld [vmem:[#allocation2 + $0x130] ss:$8 sps:$4 sm:$0xff]   ;;  %v1114_v63 = vld [vmem:[#allocation2 + $0xa4] ss:$8 sps:$4 sm:$0xff]  }
  0x27   :  { %1035 = vmatprep.subr.mxu0 %v106_v46  ;;  %v1085_v46 = vld [vmem:[#allocation2 + $0x170] ss:$8 sps:$4 sm:$0xff]   ;;  %v1111_v60 = vld [vmem:[#allocation2 + $0x134] ss:$8 sps:$4 sm:$0xff]   ;;  %v1117_v0 = vld [vmem:[#allocation2 + $0x124] ss:$8 sps:$4 sm:$0xff]  }
  0x28   :  { %1036 = vmatpush3.msra.mxu0 %v90_v50  ;;  %v1091_v50 = vld [vmem:[#allocation2 + $0x160] ss:$8 sps:$4 sm:$0xff]   ;;  %v1120_v3 = vld [vmem:[#allocation2 + $0x94] ss:$8 sps:$4 sm:$0xff]  }
  0x29   :  { %1037 = vmatprep.subr.mxu0 %v105_v52  ;;  %v1099_v52 = vld [vmem:[#allocation2 + $0x154] ss:$8 sps:$4 sm:$0xff]   ;;  %v1112_v1 = vld [vmem:[#allocation2 + $0xa0] ss:$8 sps:$4 sm:$0xff]  }
  0x2a   :  { %1038 = vmatpush3.msra.mxu0 %v89_v56  ;;  %v1105_v56 = vld [vmem:[#allocation2 + $0x144] ss:$8 sps:$4 sm:$0xff]  }
  0x2b   :  { %1039 = vmatprep.subr.mxu0 %v104_v58  ;;  %v1103_v58 = vld [vmem:[#allocation2 + $0x140] ss:$8 sps:$4 sm:$0xff]  }
  0x2c   :  { %1040 = vmatpush3.msra.mxu0 %v88_v61  ;;  %v1106_v61 = vld [vmem:[#allocation2 + $0xb0] ss:$8 sps:$4 sm:$0xff]  }
  0x2d   :  { %1041 = vmatprep.subr.mxu0 %v103_v2  ;;  %v1115_v2 = vld [vmem:[#allocation2 + $0x120] ss:$8 sps:$4 sm:$0xff]  }
  0x2e   :  { %1042 = vmatpush3.msra.mxu0 %v87_v4  ;;  %v1123_v4 = vld [vmem:[#allocation2 + $0x114] ss:$8 sps:$4 sm:$0xff]  }
  0x2f   :  { %184 = vmatmul.mubr.f32.vlgmr.msra.gmra.mxu0 %v81_v5  ;;  %864 = vmatprep.subr.bf16.mxu0 %v1087_v44  ;;  %v1118_v5 = vld [vmem:[#allocation2 + $0x90] ss:$8 sps:$4 sm:$0xff]  }
  0x30   :  { %865 = vmatpush1.bf16.msra.mxu0 %v1085_v46 }
  0x31   :  { %866 = vmatprep.subr.bf16.mxu0 %v1093_v48 }
  0x34   :  { %867 = vmatpush1.bf16.msra.mxu0 %v1091_v50 }
  0x35   :  { %868 = vmatprep.subr.bf16.mxu0 %v1099_v52 }
  0x38   :  { %869 = vmatpush1.bf16.msra.mxu0 %v1097_v54 }
  0x39   :  { %870 = vmatprep.subr.bf16.mxu0 %v1105_v56 }
  0x3c   :  { %871 = vmatpush1.bf16.msra.mxu0 %v1103_v58 }
  0x3d   :  { %872 = vmatprep.subr.bf16.mxu0 %v1111_v60 }
  0x40   :  { %873 = vmatpush1.bf16.msra.mxu0 %v1109_v62 }
  0x41   :  { %874 = vmatprep.subr.bf16.mxu0 %v1117_v0 }
  0x44   :  { %875 = vmatpush1.bf16.msra.mxu0 %v1115_v2 }
  0x45   :  { %876 = vmatprep.subr.bf16.mxu0 %v1123_v4 }
  0xef   :  { %v1043_v6 = vpop.f32.mrf.mxu0 }
  0xf1   :  { %v1044_v7 = vpop.f32.mrf.mxu0 }
  0xf2   :  { %v1045_v8 = vadd.f32 %v1044_v7, %v1043_v6  ;;  %v1121_v6 = vld [vmem:[#allocation2 + $0x110] ss:$8 sps:$4 sm:$0xff]   ;;  %v1126_v7 = vld [vmem:[#allocation2 + $0x84] ss:$8 sps:$4 sm:$0xff]  }
  0xf3   :  { %877 = vmatpush1.bf16.msra.mxu0 %v1121_v6 }
  0xf4   :  { %v190_v9 = vmul.f32 0.001953125, %v1045_v8  ;;  %v1129_v8 = vld [vmem:[#allocation2 + $0x104] ss:$8 sps:$4 sm:$0xff]  }
  0xf5   :  { %878 = vmatprep.subr.bf16.mxu0 %v1129_v8 }
  0xf6   :  { %v191_v10 = vmul.f32 %v190_v9, %v190_v9 }
  0xf8   :  { %193 = vrot.lane.b32.xlu0 %v191_v10, %s1195_s29  ;;  %v1127_v10 = vld [vmem:[#allocation2 + $0x100] ss:$8 sps:$4 sm:$0xff]  }
  0xf9   :  { %879 = vmatpush1.bf16.msra.mxu0 %v1127_v10 }
 0x16a   :  { %v194_v11 = vpop.permute.xlu0 %193 }
 0x16b   :  { %v196_v12 = vsub.f32 %v190_v9, %v194_v11  ;;  %v1198_v11 = vmov 0  }
 0x16c   :  { %896 = vmatprep.mubr.bf16.mxu0 %v1198_v11 }
 0x16d   :  { %v197_v13 = vmax.f32 %v196_v12, 0.0  ;;  %v1199_v12 = vmov 1966171168  }
 0x16f   :  { %v198_v14 = vadd.f32 1e-05, %v197_v13  ;;  %v290_v13 = vunpack.c.l.s4 %v1199_v12 }
 0x171   :  { %1130 = vrsqrt.f32 %v198_v14  ;;  %v292_v14 = vlaneseq  ;;  %v291_v16 = vunpack.c.0.s8 %v290_v13 }
 0x17e   :  { %v1131_v20 = vpop.eup %1130 }
 0x17f   :  { %201 = vrot.lane.b32.xlu0 %v1131_v20, %s1196_s8  ;;  %v1382_v20 = vshrl.u32 %v292_v14, 7 }
 0x181   :  { %v294_v21 = vsub.s32 %v291_v16, %v1382_v20  ;;  %v411_v2 = vand.u32 15, %v1382_v20  ;;  %vm463_vm3 = vcmp.lt.s32.totalorder %v1382_v20, 1  ;;  %v405_v13 = vadd.s32 16, %v1382_v20 }
 0x182   :  { %vm488_vm5 = vcmp.lt.s32.totalorder %v1382_v20, 7 }
 0x183   :  { %vm1405_vm4 = vcmp.ne.s32.totalorder %v411_v2, 0 }
 0x184   :  { %vm992_vm8 = vmpackc.low %vm1200_vm7, %vm1405_vm4 }
 0x1f1   :  { %v202_v24 = vpop.permute.xlu0 %201 }
 0x1f2   :  { %v204_v25 = vmul.f32 %v202_v24, %v190_v9  ;;  %v1124_v9 = vld [vmem:[#allocation2 + $0x80] ss:$8 sps:$4 sm:$0xff]  }
 0x1f4   :  { %206 = vrot.lane.b32.xlu1 %v204_v25, %s1195_s29 }
 0x266   :  { %v207_v27 = vpop.permute.xlu1 %206 }
 0x267   :  { %v210_v29 = vsel %vm209_vm1, %v202_v24, %v207_v27  ;;  %v338_v24 = vld [vmem:[%s1444_s1] sm:$0x1] }
 0x268   :  { %942 = vmatmul.mubr.msk.f32.vlgmr.msra.gmra.mxu1 %vm213_vm2, %v210_v29  ;;  %v1389_v29 = vsub.s32 0, %v1382_v20 }
 0x269   :  { %812 = vmatpush1.bf16.msra.mxu1 %v1058_v26 }
 0x26a   :  { %813 = vmatprep.subr.bf16.mxu1 %v1063_v28 }
 0x26d   :  { %814 = vmatpush1.bf16.msra.mxu1 %v1061_v30 }
 0x26e   :  { %815 = vmatprep.subr.bf16.mxu1 %v1066_v31 }
 0x271   :  { %816 = vmatpush1.bf16.msra.mxu1 %v1064_v32 }
 0x272   :  { %817 = vmatprep.subr.bf16.mxu1 %v1069_v33 }
 0x275   :  { %818 = vmatpush1.bf16.msra.mxu1 %v1067_v34 }
 0x276   :  { %819 = vmatprep.subr.bf16.mxu1 %v1072_v35 }
 0x279   :  { %820 = vmatpush1.bf16.msra.mxu1 %v1070_v36  ;;  %v341_v36 = vld [vmem:[%s1445_s2] sm:$0x1] }
 0x27a   :  { %821 = vmatprep.subr.bf16.mxu1 %v1075_v37 }
 0x27d   :  { %822 = vmatpush1.bf16.msra.mxu1 %v1073_v38 }
 0x27e   :  { %823 = vmatprep.subr.bf16.mxu1 %v1078_v39 }
 0x281   :  { %824 = vmatpush1.bf16.msra.mxu1 %v1076_v40 }
 0x282   :  { %825 = vmatprep.subr.bf16.mxu1 %v1081_v41 }
 0x285   :  { %826 = vmatpush1.bf16.msra.mxu1 %v1079_v42 }
 0x286   :  { %827 = vmatprep.subr.bf16.mxu1 %v1084_v43 }
 0x289   :  { %828 = vmatpush2.bf16.msra.mxu1 %v1082_v45 }
 0x28a   :  { %829 = vmatprep.subr.bf16.mxu1 %v1090_v47 }
 0x28d   :  { %830 = vmatpush2.bf16.msra.mxu1 %v1088_v49 }
 0x28e   :  { %831 = vmatprep.subr.bf16.mxu1 %v1096_v51 }
 0x291   :  { %832 = vmatpush2.bf16.msra.mxu1 %v1094_v53 }
 0x292   :  { %833 = vmatprep.subr.bf16.mxu1 %v1102_v55 }
 0x295   :  { %834 = vmatpush2.bf16.msra.mxu1 %v1100_v57 }
 0x296   :  { %835 = vmatprep.subr.bf16.mxu1 %v1108_v59 }
 0x299   :  { %836 = vmatpush2.bf16.msra.mxu1 %v1106_v61 }
 0x29a   :  { %837 = vmatprep.subr.bf16.mxu1 %v1114_v63 }
 0x29d   :  { %838 = vmatpush2.bf16.msra.mxu1 %v1112_v1  ;;  %v404_v1 = vadd.s32 8, %v1382_v20 }
 0x29e   :  { %839 = vmatprep.subr.bf16.mxu1 %v1120_v3 }
 0x29f   :  { %v418_v6 = vand.u32 15, %v404_v1 }
 0x2a1   :  { %840 = vmatpush2.bf16.msra.mxu1 %v1118_v5  ;;  %vm1009_vm6 = vcmp.ne.s32.totalorder %v418_v6, 15 }
 0x2a2   :  { %841 = vmatprep.subr.bf16.mxu1 %v1126_v7  ;;  %vm1000_vm9 = vmpackc.low %vm1009_vm6, %vm1200_vm7 }
 0x2a5   :  { %842 = vmatpush2.bf16.msra.mxu1 %v1124_v9 }
 0x328   :  { %v283_v22 = vpop.f32.mrf.mxu1 }
 0x329   :  { %v295_v23 = vrot.slane %v283_v22, %v294_v21 }
 0x32a   :  { %v285_v25 = vpop.f32.mrf.mxu1 }
 0x32b   :  { %v296_v26 = vcombine.high %v295_v23, %v295_v23  ;;  %v303_v27 = vrot.slane %v295_v23, %v294_v21  ;;  %v320_v28 = vrot.slane %v285_v25, %v294_v21 }
 0x32d   :  { %v310_v30 = vrot.slane %v296_v26, %v294_v21  ;;  %v339_v31 = vmul.f32 %v338_v24, %v303_v27  ;;  %v321_v32 = vcombine.high %v320_v28, %v320_v28  ;;  %v328_v33 = vrot.slane %v320_v28, %v294_v21 }
 0x32f   :  { %v340_v34 = vmul.f32 %v338_v24, %v310_v30  ;;  %v335_v35 = vrot.slane %v321_v32, %v294_v21  ;;  %v342_v37 = vmul.f32 %v338_v24, %v328_v33  ;;  %v351_v38 = vrot.slane %v339_v31, %v1389_v29 }
 0x330   :  { %v425_v33 = vand.u32 15, %v405_v13 }
 0x331   :  { %v355_v39 = vrot.slane %v340_v34, %v1389_v29  ;;  %v343_v40 = vmul.f32 %v338_v24, %v335_v35  ;;  %v344_v41 = vsub.f32 %v341_v36, %v342_v37  ;;  %v358_v43 = vmul.f32 %v351_v38, %v1295_v15 }
 0x332   :  { %v359_v44 = vmul.f32 %v351_v38, %v1303_v17  ;;  %v406_v24 = vadd.s32 24, %v1382_v20  ;;  %vm1008_vm10 = vcmp.ne.s32.totalorder %v425_v33, 0 }
 0x333   :  { %v345_v42 = vsub.f32 %v341_v36, %v343_v40  ;;  %v367_v45 = vrot.slane %v344_v41, %v1389_v29  ;;  %v360_v46 = vmul.f32 %v355_v39, %v1308_v18  ;;  %v361_v47 = vmul.f32 %v355_v39, %v1313_v19  ;;  %vm996_vm12 = vmpackc.low %vm1200_vm7, %vm1008_vm10 }
 0x334   :  { %v432_v36 = vand.u32 15, %v406_v24 }
 0x335   :  { %v371_v48 = vrot.slane %v345_v42, %v1389_v29  ;;  %v374_v49 = vadd.f32 %v367_v45, %v358_v43  ;;  %v375_v50 = vadd.f32 %v367_v45, %v359_v44  ;;  %v559_v45 = vld [vmem:[%s1449_s6] sm:$0x3]  ;;  %s1201_s6 = smov [#allocation5]  }
 0x336   :  { %vm1010_vm11 = vcmp.ne.s32.totalorder %v432_v36, 15  ;;  %s930_s14 = sshll.u32 %s1201_s6, 4  ;;  %s931_s14 = int_to_ptr.vmem [resolvable:$true] %s930_s14 }
 0x337   :  { %v376_v51 = vadd.f32 %v371_v48, %v360_v46  ;;  %v377_v52 = vadd.f32 %v371_v48, %v361_v47  ;;  %v378_v53 = vsub.f32 0.0, %v374_v49  ;;  %v379_v54 = vsub.f32 0.0, %v375_v50  ;;  %vm1004_vm13 = vmpackc.low %vm1010_vm11, %vm1200_vm7  ;;  %s1168_s15 = scalar_lea.vmem %s931_s14, 1024  ;;  %p1173_p6 = scmp.lt.s32.totalorder %s931_s14, %s931_s14 }
 0x338   :  { %v567_v46 = vsub.s32 1, %v1382_v20  ;;  %v564_v47 = vrot.slane %v559_v45, %v1389_v29  ;;  %p1169_p5 = scmp.ne.s32.totalorder %s931_s14, %s1168_s15  ;;  %p1174_p7 = scmp.lt.s32.totalorder %s1168_s15, %s1168_s15 }
 0x339   :  { %v380_v55 = vsub.f32 0.0, %v376_v51  ;;  %v381_v56 = vsub.f32 0.0, %v377_v52  ;;  %v382_v57 = vmul.f32 1.442695, %v378_v53  ;;  %v384_v17 = vmul.f32 1.442695, %v379_v54 }
 0x33a   :  { %v568_v48 = vrot.slane %v559_v45, %v567_v46  ;;  %p1175_p8 = por %p1174_p7, %p1173_p6 }
 0x33b   :  { %v386_v15 = vmul.f32 1.442695, %v380_v55  ;;  %v388_v58 = vmul.f32 1.442695, %v381_v56  ;;  %1132 = vpow2.f32 %v382_v57 }
 0x33c   :  { %p1176_p9 = pnand %p1175_p8, %p1169_p5 }
 0x33d   :  { %1134 = vpow2.f32 %v386_v15 }
 0x33e   :  { %1136 = vpow2.f32 %v388_v58 }
 0x33f   :  { %1138 = vpow2.f32 %v384_v17 }
 0x348   :  { %v1133_v18 = vpop.eup %1132 }
 0x349   :  { %v390_v59 = vadd.f32 1.0, %v1133_v18 }
 0x34a   :  { %v1135_v19 = vpop.eup %1134 }
 0x34b   :  { %v1137_v60 = vpop.eup %1136  ;;  %v392_v61 = vadd.f32 1.0, %v1135_v19  ;;  %1140 = vrcp.f32 %v390_v59 }
 0x34c   :  { %v1139_v62 = vpop.eup %1138  ;;  %v393_v63 = vadd.f32 1.0, %v1137_v60 }
 0x34d   :  { %1142 = vrcp.f32 %v392_v61  ;;  %v391_v0 = vadd.f32 1.0, %v1139_v62 }
 0x34e   :  { %1144 = vrcp.f32 %v393_v63 }
 0x34f   :  { %1146 = vrcp.f32 %v391_v0 }
 0x358   :  { %v1141_v3 = vpop.eup %1140 }
 0x359   :  { %v398_v5 = vmul.f32 %v1141_v3, %v374_v49 }
 0x35a   :  { %v1143_v4 = vpop.eup %1142 }
 0x35b   :  { %v1145_v7 = vpop.eup %1144  ;;  %v400_v8 = vmul.f32 %v1143_v4, %v376_v51  ;;  %v459_v16 = vrot.slane %v398_v5, 7  ;;  %v484_v21 = vrot.slane %v398_v5, 1 }
 0x35c   :  { %v1147_v9 = vpop.eup %1146  ;;  %v401_v10 = vmul.f32 %v1145_v7, %v377_v52 }
 0x35d   :  { %v399_v14 = vmul.f32 %v1147_v9, %v375_v50  ;;  %v486_v22 = vrot.slane %v400_v8, 1  ;;  %v461_v38 = vrot.slane %v400_v8, 7 }
 0x35e   :  { %v462_v23 = vrot.slane %v401_v10, 7  ;;  %v508_v37 = vpack.c.bf16 %v401_v10, %v400_v8  ;;  %v487_v39 = vrot.slane %v401_v10, 1 }
 0x35f   :  { %v460_v25 = vrot.slane %v399_v14, 7  ;;  %v485_v26 = vrot.slane %v399_v14, 1  ;;  %v507_v27 = vpack.c.bf16 %v399_v14, %v398_v5 }
 0x360   :  { %v467_v28 = vsel %vm463_vm3, %v462_v23, %v459_v16  ;;  %v464_v40 = vsel %vm463_vm3, %v461_v38, %v462_v23  ;;  %v489_v42 = vsel %vm488_vm5, %v486_v22, %v487_v39  ;;  %v492_v43 = vsel %vm488_vm5, %v487_v39, %v484_v21 }
 0x361   :  { %843 = vmatprep.mubr.bf16.mxu1 %v507_v27  ;;  %v466_v30 = vsel %vm463_vm3, %v459_v16, %v460_v25  ;;  %v490_v31 = vsel %vm488_vm5, %v485_v26, %v486_v22  ;;  %v491_v32 = vsel %vm488_vm5, %v484_v21, %v485_v26  ;;  %v465_v41 = vsel %vm463_vm3, %v460_v25, %v461_v38 }
 0x362   :  { %v993_v34 = vpack.c.bf16 %v466_v30, %v467_v28  ;;  %v1001_v35 = vpack.c.bf16 %v490_v31, %v491_v32  ;;  %v997_v44 = vpack.c.bf16 %v464_v40, %v465_v41 }
 0x364   :  { %994 = vmatmul.mubr.msk.bf16.vlgmr.msra.gmra.mxu1 %vm992_vm8, %v993_v34  ;;  %1002 = vmatmul.mubr.msk.bf16.vlgmr.msra.gmra.mxu0 %vm1000_vm9, %v1001_v35 }
 0x365   :  { %853 = vmatprep.mubr.bf16.mxu1 %v508_v37  ;;  %906 = vmatprep.mubr.bf16.mxu0 %v1198_v11  ;;  %v1005_v11 = vpack.c.bf16 %v492_v43, %v489_v42 }
 0x36c   :  { %998 = vmatmul.mubr.msk.bf16.gmra.mxu1 %vm996_vm12, %v997_v44  ;;  %1006 = vmatmul.mubr.msk.bf16.gmra.mxu0 %vm1004_vm13, %v1005_v11 }
 0x424   :  { %v845_v49 = vpop.f32.mrf.mxu1  ;;  %v898_v50 = vpop.f32.mrf.mxu0 }
 0x425   :  { %v846_v51 = vadd.f32 %v845_v49, %v564_v47 }
 0x426   :  { %v847_v52 = vpop.f32.mrf.mxu1  ;;  %v900_v53 = vpop.f32.mrf.mxu0 }
 0x427   :  { %v899_v54 = vadd.f32 %v898_v50, %v846_v51  ;;  %v848_v55 = vadd.f32 %v847_v52, %v568_v48 }
 0x428   :  { %v849_v56 = vpop.f32.mrf.mxu1  ;;  %v902_v57 = vpop.f32.mrf.mxu0 }
 0x429   :  { %917 = vst [vmem:[#allocation5] sm:$0xff] %v899_v54  ;;  %v901_v15 = vadd.f32 %v900_v53, %v848_v55  ;;  %v850_v58 = vadd.f32 %v849_v56, %v564_v47 }
 0x42a   :  { %v851_v17 = vpop.f32.mrf.mxu1  ;;  %v904_v18 = vpop.f32.mrf.mxu0 }
 0x42b   :  { %918 = vst [vmem:[#allocation5 + $0x8] sm:$0xff] %v901_v15  ;;  %v903_v19 = vadd.f32 %v902_v57, %v850_v58  ;;  %v852_v20 = vadd.f32 %v851_v17, %v568_v48 }
 0x42c   :  { %v855_v59 = vpop.f32.mrf.mxu1  ;;  %v908_v29 = vpop.f32.mrf.mxu0 }
 0x42d   :  { %919 = vst [vmem:[#allocation5 + $0x10] sm:$0xff] %v903_v19  ;;  %v905_v60 = vadd.f32 %v904_v18, %v852_v20  ;;  %v856_v61 = vadd.f32 %v855_v59, %v564_v47 }
 0x42e   :  { %v857_v62 = vpop.f32.mrf.mxu1  ;;  %v910_v63 = vpop.f32.mrf.mxu0 }
 0x42f   :  { %920 = vst [vmem:[#allocation5 + $0x18] sm:$0xff] %v905_v60  ;;  %v909_v0 = vadd.f32 %v908_v29, %v856_v61  ;;  %v858_v1 = vadd.f32 %v857_v62, %v568_v48 }
 0x430   :  { %v859_v2 = vpop.f32.mrf.mxu1  ;;  %v912_v3 = vpop.f32.mrf.mxu0 }
 0x431   :  { %921 = vst [vmem:[#allocation5 + $0x20] sm:$0xff] %v909_v0  ;;  %v911_v4 = vadd.f32 %v910_v63, %v858_v1  ;;  %v860_v5 = vadd.f32 %v859_v2, %v564_v47 }
 0x432   :  { %v861_v6 = vpop.f32.mrf.mxu1  ;;  %v914_v9 = vpop.f32.mrf.mxu0 }
 0x433   :  { %922 = vst [vmem:[#allocation5 + $0x28] sm:$0xff] %v911_v4  ;;  %v913_v7 = vadd.f32 %v912_v3, %v860_v5  ;;  %v862_v8 = vadd.f32 %v861_v6, %v568_v48 }
 0x435   :  { %923 = vst [vmem:[#allocation5 + $0x30] sm:$0xff] %v913_v7  ;;  %v915_v10 = vadd.f32 %v914_v9, %v862_v8 }
 0x437   :  { %924 = vst [vmem:[#allocation5 + $0x38] sm:$0xff] %v915_v10 }
 0x438   :  { %1179 = shalt.err (!%p1176_p9)
}
 0x439   :  { %s1202_s5 = smov 256   ;;  %s1203_s16 = smov 16  }
 0x43a   :  { %936 = dma.vmem_to_hbm [thread:$0]  %s931_s14, 1024, %s1450_s7, [#allocation4], %s1202_s5, %s1202_s5, %s1203_s16  }
 0x43b   :  { %1190 = dma.done.wait [#allocation4], 1024  }
 0x43c   :  { %1191 = vsyncadd [#allocation4], 4294966272 }
 0x43d   :  { %940 = vsyncpa [#allocation3], 1 }
 0x43e   :  { %941 = vsyncpa [#allocation4], 1 }

</bundles_post_ra>
